<compile_context>
chip_gen: v6e
topology: v6e:2x2x1
jax: 0.10.0
libtpu: 0.0.40
codegen_flags: <defaults>
</compile_context>

<pallas_src>
import functools

import jax
import jax.numpy as jnp
from jax import lax
from jax.experimental import pallas as pl
from jax.experimental.pallas import tpu as pltpu


def _crf_loss_kernel(start_tag, end_tag, inv_bat,
                     scores_ref, target_ref, mask_ref, amask_ref,
                     loss_ref, part_ref, tg_ref):
    tb = pl.program_id(0)
    nb = pl.num_programs(0)
    TL, B, T, _ = scores_ref.shape

    # --- init carries on the first grid step ---
    @pl.when(tb == 0)
    def _():
        part_ref[...] = jnp.zeros_like(part_ref)
        tg_ref[...] = jnp.zeros_like(tg_ref)

    # Hoisted flat gold-path index (from_tag * T + to_tag). JAX does not CSE
    # broadcast_in_dim, so build it once outside the per-timestep loop.
    row = jax.lax.broadcasted_iota(jnp.int32, (B, T, T), 1)
    col = jax.lax.broadcasted_iota(jnp.int32, (B, T, T), 2)
    flat_idx = row * T + col                                        # (B, T, T)

    part0 = part_ref[...]                                           # (B, T)
    tg0 = tg_ref[...]                                               # (B, 1)

    def body(i, carry):
        part, tg = carry
        t_global = tb * TL + i
        cur = scores_ref[i].astype(jnp.float32)                     # (B, T, T)
        tgt = target_ref[i]                                         # (B, 1) i32
        msk = mask_ref[i]                                           # (B, 1) f32

        # gold-path energy: compare + select + reduce (no float one-hot / mul)
        sel = flat_idx == tgt[:, :, None]                           # (B, T, T)
        contrib = jnp.sum(jnp.sum(jnp.where(sel, cur, 0.0), axis=2),
                          axis=1, keepdims=True)                    # (B, 1)
        tg_new = tg + jnp.where(msk > 0.0, contrib, 0.0)

        # forward recursion: logsumexp over the from-tag axis
        cv = cur + part[:, :, None]                                 # (B, T, T)
        mmax = jnp.max(cv, axis=1, keepdims=True)                   # (B, 1, T)
        lse = mmax[:, 0, :] + jnp.log(jnp.sum(jnp.exp(cv - mmax), axis=1))
        init_part = cur[:, start_tag, :]                            # (B, T)
        # t == 0: partition <- scores[0][:, start_tag, :]
        # t >  0: masked_scatter_ equivalent (keep previous where mask == 0)
        part_new = jnp.where(t_global == 0, init_part,
                             jnp.where(msk > 0.0, lse, part))
        return part_new, tg_new

    part_f, tg_f = lax.fori_loop(0, TL, body, (part0, tg0),
                                 unroll=(TL <= 32))

    # spill carries once per grid step
    part_ref[...] = part_f
    tg_ref[...] = tg_f

    # --- finalize on the last grid step: masked batch reduction of the NLL ---
    @pl.when(tb == nb - 1)
    def _():
        p_end = part_f[:, end_tag:end_tag + 1]                      # (B, 1)
        losses = p_end - tg_f                                       # (B, 1)
        total = jnp.sum(jnp.where(amask_ref[...] > 0.0, losses, 0.0))
        loss_ref[...] = (total * inv_bat).reshape(1, 1)


def crf_loss_ma(scores, target, mask, a_mask, start_tag, end_tag,
                average_batch=True):
    """Pallas implementation of CRFLoss_ma.forward."""
    L, B, T, T2 = scores.shape
    assert T == T2

    # Time-block size: amortize grid-step overhead while keeping the scores
    # double buffer under ~8 MiB of scoped VMEM.
    bytes_per_step = B * T * T * jnp.dtype(scores.dtype).itemsize
    TL = max(1, min(L, 128, (8 * 1024 * 1024) // max(1, 2 * bytes_per_step)))
    num_blocks = -(-L // TL)
    L_pad = num_blocks * TL
    if L_pad != L:
        pad = L_pad - L
        # Padded steps carry mask == 0, so they neither move the partition nor
        # contribute gold-path energy.
        scores = jnp.pad(scores, ((0, pad), (0, 0), (0, 0), (0, 0)))
        target = jnp.pad(target, ((0, pad), (0, 0)))
        mask = jnp.pad(mask, ((0, pad), (0, 0)))

    target3 = target.astype(jnp.int32).reshape(L_pad, B, 1)
    mask3 = mask.astype(jnp.float32).reshape(L_pad, B, 1)
    amask2 = a_mask.astype(jnp.float32).reshape(B, 1)
    inv_bat = (1.0 / B) if average_batch else 1.0

    kernel = functools.partial(_crf_loss_kernel, start_tag, end_tag, inv_bat)
    out = pl.pallas_call(
        kernel,
        out_shape=jax.ShapeDtypeStruct((1, 1), jnp.float32),
        grid_spec=pltpu.PrefetchScalarGridSpec(
            num_scalar_prefetch=0,
            grid=(num_blocks,),
            in_specs=[
                pl.BlockSpec((TL, B, T, T), lambda t: (t, 0, 0, 0)),  # scores
                pl.BlockSpec((TL, B, 1), lambda t: (t, 0, 0)),        # target
                pl.BlockSpec((TL, B, 1), lambda t: (t, 0, 0)),        # mask
                pl.BlockSpec((B, 1), lambda t: (0, 0)),               # a_mask
            ],
            out_specs=pl.BlockSpec((1, 1), lambda t: (0, 0)),
            scratch_shapes=[
                pltpu.VMEM((B, T), jnp.float32),   # partition carry
                pltpu.VMEM((B, 1), jnp.float32),   # gold-path energy carry
            ],
        ),
        compiler_params=pltpu.CompilerParams(
            dimension_semantics=("arbitrary",)),
    )(scores, target3, mask3, amask2)
    return out[0, 0]


def crf_loss_ref(scores, target, mask, a_mask, start_tag, end_tag,
                 average_batch=True):
    """Pure-JAX reference mirroring the PyTorch forward exactly."""
    L, B, T, _ = scores.shape
    flat = scores.reshape(L, B, T * T)
    tg = jnp.take_along_axis(flat, target[:, :, None], axis=2)[:, :, 0]
    tg = jnp.where(mask > 0, tg, 0.0).sum(axis=0)
    partition = scores[0, :, start_tag, :]
    for t in range(1, L):
        cv = scores[t] + partition[:, :, None]
        cp = jax.scipy.special.logsumexp(cv, axis=1)
        partition = jnp.where(mask[t][:, None] > 0, cp, partition)
    losses = partition[:, end_tag] - tg
    loss = jnp.sum(jnp.where(a_mask > 0, losses, 0.0))
    return loss / B if average_batch else loss


if __name__ == "__main__":
    # tag map (no learned parameters in this module)
    y_map = {'O': 0, 'B': 1, 'I': 2, 'E': 3, '<s>': 4, '<eof>': 5}
    T = len(y_map)
    start_tag = y_map['<s>']
    end_tag = y_map['<eof>']
    L, B = 8, 2   # seq_len, batch

    key = jax.random.PRNGKey(0)
    k1, k2 = jax.random.split(key)
    scores = jax.random.normal(k1, (L, B, T, T), dtype=jnp.float32)
    target = jax.random.randint(k2, (L, B), 0, T * T, dtype=jnp.int32)
    lens = jnp.array([L, 5], dtype=jnp.int32)
    mask = (jnp.arange(L)[:, None] < lens[None, :]).astype(jnp.int32)  # (L, B)
    a_mask = jnp.array([1, 1], dtype=jnp.int32)                        # (B,)

    loss = crf_loss_ma(scores, target, mask, a_mask, start_tag, end_tag,
                       average_batch=True)
    loss = jax.block_until_ready(loss)

    ref = crf_loss_ref(scores, target, mask, a_mask, start_tag, end_tag,
                       average_batch=True)
    assert jnp.allclose(loss, ref, rtol=1e-5, atol=1e-5), (loss, ref)
    print("KERNEL_OK")
</pallas_src>

<mosaic_0001>
module attributes {stable_mosaic.version = 11 : i64} {
  func.func @_crf_loss_kernel(%arg0: i32, %arg1: memref<8x2x6x6xf32, #tpu.memory_space<vmem>>, %arg2: memref<8x2x1xi32, #tpu.memory_space<vmem>>, %arg3: memref<8x2x1xf32, #tpu.memory_space<vmem>>, %arg4: memref<2x1xf32, #tpu.memory_space<vmem>>, %arg5: memref<1x1xf32, #tpu.memory_space<vmem>>, %arg6: memref<2x6xf32, #tpu.memory_space<vmem>>, %arg7: memref<2x1xf32, #tpu.memory_space<vmem>>) attributes {dimension_semantics = [#tpu.dimension_semantics<arbitrary>], iteration_bounds = array<i64: 1>, scalar_prefetch = 0 : i64, scratch_operands = 2 : i64, tpu.core_type = #tpu.core_type<tc>, window_params = [{transform_indices = @transform_0, window_bounds = array<i64: 8, 2, 6, 6>}, {transform_indices = @transform_1, window_bounds = array<i64: 8, 2, 1>}, {transform_indices = @transform_2, window_bounds = array<i64: 8, 2, 1>}, {pipeline_mode = #tpu.pipeline_mode<synchronous>, transform_indices = @transform_3, window_bounds = array<i64: 2, 1>}, {pipeline_mode = #tpu.pipeline_mode<synchronous>, transform_indices = @transform_4, window_bounds = array<i64: 1, 1>}]} {
    %c0_i32 = arith.constant 0 : i32
    %0 = arith.cmpi eq, %arg0, %c0_i32 : i32
    %1 = arith.extui %0 : i1 to i32
    %c0_i32_0 = arith.constant 0 : i32
    %2 = arith.cmpi ne, %1, %c0_i32_0 : i32
    scf.if %2 {
      %cst_147 = arith.constant 0.000000e+00 : f32
      %375 = vector.broadcast %cst_147 : f32 to vector<2x6xf32>
      %c0_148 = arith.constant 0 : index
      %c0_149 = arith.constant 0 : index
      %376 = vector.load %arg6[%c0_148, %c0_149] : memref<2x6xf32, #tpu.memory_space<vmem>>, vector<2x6xf32>
      tpu.vector_store %arg6[%c0_148, %c0_149], %375 {strides = array<i32>} : memref<2x6xf32, #tpu.memory_space<vmem>>, vector<2x6xf32>,
      %cst_150 = arith.constant 0.000000e+00 : f32
      %377 = vector.broadcast %cst_150 : f32 to vector<2x1xf32>
      %c0_151 = arith.constant 0 : index
      %c0_152 = arith.constant 0 : index
      %378 = vector.load %arg7[%c0_151, %c0_152] : memref<2x1xf32, #tpu.memory_space<vmem>>, vector<2x1xf32>
      tpu.vector_store %arg7[%c0_151, %c0_152], %377 {strides = array<i32>} : memref<2x1xf32, #tpu.memory_space<vmem>>, vector<2x1xf32>,
    } else {
    }
    %3 = tpu.iota {dimensions = array<i32: 1>} : vector<2x6x6xi32>
    %4 = tpu.iota {dimensions = array<i32: 2>} : vector<2x6x6xi32>
    %c6_i32 = arith.constant 6 : i32
    %5 = vector.broadcast %c6_i32 : i32 to vector<2x6x6xi32>
    %6 = arith.muli %3, %5 : vector<2x6x6xi32>
    %7 = arith.addi %6, %4 : vector<2x6x6xi32>
    %c0 = arith.constant 0 : index
    %c0_1 = arith.constant 0 : index
    %8 = vector.load %arg6[%c0, %c0_1] : memref<2x6xf32, #tpu.memory_space<vmem>>, vector<2x6xf32>
    %c0_2 = arith.constant 0 : index
    %c0_3 = arith.constant 0 : index
    %9 = vector.load %arg7[%c0_2, %c0_3] : memref<2x1xf32, #tpu.memory_space<vmem>>, vector<2x1xf32>
    %c0_i32_4 = arith.constant 0 : i32
    %c8_i32 = arith.constant 8 : i32
    %10 = arith.muli %arg0, %c8_i32 : i32
    %11 = arith.addi %10, %c0_i32_4 : i32
    %12 = arith.index_cast %c0_i32_4 : i32 to index
    %c0_5 = arith.constant 0 : index
    %c0_6 = arith.constant 0 : index
    %c0_7 = arith.constant 0 : index
    %13 = vector.load %arg1[%12, %c0_5, %c0_6, %c0_7] : memref<8x2x6x6xf32, #tpu.memory_space<vmem>>, vector<1x2x6x6xf32>
    %14 = vector.shape_cast %13 : vector<1x2x6x6xf32> to vector<2x6x6xf32>
    %15 = arith.index_cast %c0_i32_4 : i32 to index
    %c0_8 = arith.constant 0 : index
    %c0_9 = arith.constant 0 : index
    %16 = vector.load %arg2[%15, %c0_8, %c0_9] : memref<8x2x1xi32, #tpu.memory_space<vmem>>, vector<1x2x1xi32>
    %17 = vector.shape_cast %16 : vector<1x2x1xi32> to vector<2x1xi32>
    %18 = arith.index_cast %c0_i32_4 : i32 to index
    %c0_10 = arith.constant 0 : index
    %c0_11 = arith.constant 0 : index
    %19 = vector.load %arg3[%18, %c0_10, %c0_11] : memref<8x2x1xf32, #tpu.memory_space<vmem>>, vector<1x2x1xf32>
    %20 = vector.shape_cast %19 : vector<1x2x1xf32> to vector<2x1xf32>
    %21 = vector.shape_cast %17 : vector<2x1xi32> to vector<2x1x1xi32>
    %22 = vector.broadcast %21 : vector<2x1x1xi32> to vector<2x6x6xi32>
    %23 = arith.cmpi eq, %7, %22 : vector<2x6x6xi32>
    %cst = arith.constant 0.000000e+00 : f32
    %24 = vector.broadcast %cst : f32 to vector<2x6x6xf32>
    %25 = arith.select %23, %14, %24 : vector<2x6x6xi1>, vector<2x6x6xf32>
    %cst_12 = arith.constant dense<0.000000e+00> : vector<2x6xf32>
    %26 = vector.multi_reduction <add>, %25, %cst_12 [2] : vector<2x6x6xf32> to vector<2x6xf32>
    %cst_13 = arith.constant dense<0.000000e+00> : vector<2xf32>
    %27 = vector.multi_reduction <add>, %26, %cst_13 [1] : vector<2x6xf32> to vector<2xf32>
    %28 = vector.shape_cast %27 : vector<2xf32> to vector<2x1xf32>
    %cst_14 = arith.constant 0.000000e+00 : f32
    %29 = vector.broadcast %cst_14 : f32 to vector<2x1xf32>
    %30 = arith.cmpf ogt, %20, %29 : vector<2x1xf32>
    %cst_15 = arith.constant 0.000000e+00 : f32
    %31 = vector.broadcast %cst_15 : f32 to vector<2x1xf32>
    %32 = arith.select %30, %28, %31 : vector<2x1xi1>, vector<2x1xf32>
    %33 = arith.addf %9, %32 : vector<2x1xf32>
    %34 = vector.shape_cast %8 : vector<2x6xf32> to vector<2x6x1xf32>
    %35 = vector.broadcast %34 : vector<2x6x1xf32> to vector<2x6x6xf32>
    %36 = arith.addf %14, %35 : vector<2x6x6xf32>
    %cst_16 = arith.constant dense<0xFF800000> : vector<2x6xf32>
    %37 = vector.multi_reduction <maximumf>, %36, %cst_16 [1] : vector<2x6x6xf32> to vector<2x6xf32>
    %38 = vector.shape_cast %37 : vector<2x6xf32> to vector<2x1x6xf32>
    %39 = vector.shape_cast %38 : vector<2x1x6xf32> to vector<2x6xf32>
    %40 = vector.broadcast %38 : vector<2x1x6xf32> to vector<2x6x6xf32>
    %41 = arith.subf %36, %40 : vector<2x6x6xf32>
    %42 = math.exp %41 : vector<2x6x6xf32>
    %cst_17 = arith.constant dense<0.000000e+00> : vector<2x6xf32>
    %43 = vector.multi_reduction <add>, %42, %cst_17 [1] : vector<2x6x6xf32> to vector<2x6xf32>
    %44 = math.log %43 : vector<2x6xf32>
    %45 = arith.addf %39, %44 : vector<2x6xf32>
    %46 = vector.extract_strided_slice %14 {offsets = [0, 4, 0], sizes = [2, 1, 6], strides = [1, 1, 1]} : vector<2x6x6xf32> to vector<2x1x6xf32>
    %47 = vector.shape_cast %46 : vector<2x1x6xf32> to vector<2x6xf32>
    %c0_i32_18 = arith.constant 0 : i32
    %48 = arith.cmpi eq, %11, %c0_i32_18 : i32
    %cst_19 = arith.constant 0.000000e+00 : f32
    %49 = vector.broadcast %cst_19 : f32 to vector<2x1xf32>
    %50 = arith.cmpf ogt, %20, %49 : vector<2x1xf32>
    %51 = vector.shape_cast %50 : vector<2x1xi1> to vector<2x1xi1>
    %52 = vector.broadcast %51 : vector<2x1xi1> to vector<2x6xi1>
    %53 = arith.select %52, %45, %8 : vector<2x6xi1>, vector<2x6xf32>
    %54 = arith.select %48, %47, %53 : vector<2x6xf32>
    %c1_i32 = arith.constant 1 : i32
    %c8_i32_20 = arith.constant 8 : i32
    %55 = arith.muli %arg0, %c8_i32_20 : i32
    %56 = arith.addi %55, %c1_i32 : i32
    %57 = arith.index_cast %c1_i32 : i32 to index
    %c0_21 = arith.constant 0 : index
    %c0_22 = arith.constant 0 : index
    %c0_23 = arith.constant 0 : index
    %58 = vector.load %arg1[%57, %c0_21, %c0_22, %c0_23] : memref<8x2x6x6xf32, #tpu.memory_space<vmem>>, vector<1x2x6x6xf32>
    %59 = vector.shape_cast %58 : vector<1x2x6x6xf32> to vector<2x6x6xf32>
    %60 = arith.index_cast %c1_i32 : i32 to index
    %c0_24 = arith.constant 0 : index
    %c0_25 = arith.constant 0 : index
    %61 = vector.load %arg2[%60, %c0_24, %c0_25] : memref<8x2x1xi32, #tpu.memory_space<vmem>>, vector<1x2x1xi32>
    %62 = vector.shape_cast %61 : vector<1x2x1xi32> to vector<2x1xi32>
    %63 = arith.index_cast %c1_i32 : i32 to index
    %c0_26 = arith.constant 0 : index
    %c0_27 = arith.constant 0 : index
    %64 = vector.load %arg3[%63, %c0_26, %c0_27] : memref<8x2x1xf32, #tpu.memory_space<vmem>>, vector<1x2x1xf32>
    %65 = vector.shape_cast %64 : vector<1x2x1xf32> to vector<2x1xf32>
    %66 = vector.shape_cast %62 : vector<2x1xi32> to vector<2x1x1xi32>
    %67 = vector.broadcast %66 : vector<2x1x1xi32> to vector<2x6x6xi32>
    %68 = arith.cmpi eq, %7, %67 : vector<2x6x6xi32>
    %cst_28 = arith.constant 0.000000e+00 : f32
    %69 = vector.broadcast %cst_28 : f32 to vector<2x6x6xf32>
    %70 = arith.select %68, %59, %69 : vector<2x6x6xi1>, vector<2x6x6xf32>
    %cst_29 = arith.constant dense<0.000000e+00> : vector<2x6xf32>
    %71 = vector.multi_reduction <add>, %70, %cst_29 [2] : vector<2x6x6xf32> to vector<2x6xf32>
    %cst_30 = arith.constant dense<0.000000e+00> : vector<2xf32>
    %72 = vector.multi_reduction <add>, %71, %cst_30 [1] : vector<2x6xf32> to vector<2xf32>
    %73 = vector.shape_cast %72 : vector<2xf32> to vector<2x1xf32>
    %cst_31 = arith.constant 0.000000e+00 : f32
    %74 = vector.broadcast %cst_31 : f32 to vector<2x1xf32>
    %75 = arith.cmpf ogt, %65, %74 : vector<2x1xf32>
    %cst_32 = arith.constant 0.000000e+00 : f32
    %76 = vector.broadcast %cst_32 : f32 to vector<2x1xf32>
    %77 = arith.select %75, %73, %76 : vector<2x1xi1>, vector<2x1xf32>
    %78 = arith.addf %33, %77 : vector<2x1xf32>
    %79 = vector.shape_cast %54 : vector<2x6xf32> to vector<2x6x1xf32>
    %80 = vector.broadcast %79 : vector<2x6x1xf32> to vector<2x6x6xf32>
    %81 = arith.addf %59, %80 : vector<2x6x6xf32>
    %cst_33 = arith.constant dense<0xFF800000> : vector<2x6xf32>
    %82 = vector.multi_reduction <maximumf>, %81, %cst_33 [1] : vector<2x6x6xf32> to vector<2x6xf32>
    %83 = vector.shape_cast %82 : vector<2x6xf32> to vector<2x1x6xf32>
    %84 = vector.shape_cast %83 : vector<2x1x6xf32> to vector<2x6xf32>
    %85 = vector.broadcast %83 : vector<2x1x6xf32> to vector<2x6x6xf32>
    %86 = arith.subf %81, %85 : vector<2x6x6xf32>
    %87 = math.exp %86 : vector<2x6x6xf32>
    %cst_34 = arith.constant dense<0.000000e+00> : vector<2x6xf32>
    %88 = vector.multi_reduction <add>, %87, %cst_34 [1] : vector<2x6x6xf32> to vector<2x6xf32>
    %89 = math.log %88 : vector<2x6xf32>
    %90 = arith.addf %84, %89 : vector<2x6xf32>
    %91 = vector.extract_strided_slice %59 {offsets = [0, 4, 0], sizes = [2, 1, 6], strides = [1, 1, 1]} : vector<2x6x6xf32> to vector<2x1x6xf32>
    %92 = vector.shape_cast %91 : vector<2x1x6xf32> to vector<2x6xf32>
    %c0_i32_35 = arith.constant 0 : i32
    %93 = arith.cmpi eq, %56, %c0_i32_35 : i32
    %cst_36 = arith.constant 0.000000e+00 : f32
    %94 = vector.broadcast %cst_36 : f32 to vector<2x1xf32>
    %95 = arith.cmpf ogt, %65, %94 : vector<2x1xf32>
    %96 = vector.shape_cast %95 : vector<2x1xi1> to vector<2x1xi1>
    %97 = vector.broadcast %96 : vector<2x1xi1> to vector<2x6xi1>
    %98 = arith.select %97, %90, %54 : vector<2x6xi1>, vector<2x6xf32>
    %99 = arith.select %93, %92, %98 : vector<2x6xf32>
    %c2_i32 = arith.constant 2 : i32
    %c8_i32_37 = arith.constant 8 : i32
    %100 = arith.muli %arg0, %c8_i32_37 : i32
    %101 = arith.addi %100, %c2_i32 : i32
    %102 = arith.index_cast %c2_i32 : i32 to index
    %c0_38 = arith.constant 0 : index
    %c0_39 = arith.constant 0 : index
    %c0_40 = arith.constant 0 : index
    %103 = vector.load %arg1[%102, %c0_38, %c0_39, %c0_40] : memref<8x2x6x6xf32, #tpu.memory_space<vmem>>, vector<1x2x6x6xf32>
    %104 = vector.shape_cast %103 : vector<1x2x6x6xf32> to vector<2x6x6xf32>
    %105 = arith.index_cast %c2_i32 : i32 to index
    %c0_41 = arith.constant 0 : index
    %c0_42 = arith.constant 0 : index
    %106 = vector.load %arg2[%105, %c0_41, %c0_42] : memref<8x2x1xi32, #tpu.memory_space<vmem>>, vector<1x2x1xi32>
    %107 = vector.shape_cast %106 : vector<1x2x1xi32> to vector<2x1xi32>
    %108 = arith.index_cast %c2_i32 : i32 to index
    %c0_43 = arith.constant 0 : index
    %c0_44 = arith.constant 0 : index
    %109 = vector.load %arg3[%108, %c0_43, %c0_44] : memref<8x2x1xf32, #tpu.memory_space<vmem>>, vector<1x2x1xf32>
    %110 = vector.shape_cast %109 : vector<1x2x1xf32> to vector<2x1xf32>
    %111 = vector.shape_cast %107 : vector<2x1xi32> to vector<2x1x1xi32>
    %112 = vector.broadcast %111 : vector<2x1x1xi32> to vector<2x6x6xi32>
    %113 = arith.cmpi eq, %7, %112 : vector<2x6x6xi32>
    %cst_45 = arith.constant 0.000000e+00 : f32
    %114 = vector.broadcast %cst_45 : f32 to vector<2x6x6xf32>
    %115 = arith.select %113, %104, %114 : vector<2x6x6xi1>, vector<2x6x6xf32>
    %cst_46 = arith.constant dense<0.000000e+00> : vector<2x6xf32>
    %116 = vector.multi_reduction <add>, %115, %cst_46 [2] : vector<2x6x6xf32> to vector<2x6xf32>
    %cst_47 = arith.constant dense<0.000000e+00> : vector<2xf32>
    %117 = vector.multi_reduction <add>, %116, %cst_47 [1] : vector<2x6xf32> to vector<2xf32>
    %118 = vector.shape_cast %117 : vector<2xf32> to vector<2x1xf32>
    %cst_48 = arith.constant 0.000000e+00 : f32
    %119 = vector.broadcast %cst_48 : f32 to vector<2x1xf32>
    %120 = arith.cmpf ogt, %110, %119 : vector<2x1xf32>
    %cst_49 = arith.constant 0.000000e+00 : f32
    %121 = vector.broadcast %cst_49 : f32 to vector<2x1xf32>
    %122 = arith.select %120, %118, %121 : vector<2x1xi1>, vector<2x1xf32>
    %123 = arith.addf %78, %122 : vector<2x1xf32>
    %124 = vector.shape_cast %99 : vector<2x6xf32> to vector<2x6x1xf32>
    %125 = vector.broadcast %124 : vector<2x6x1xf32> to vector<2x6x6xf32>
    %126 = arith.addf %104, %125 : vector<2x6x6xf32>
    %cst_50 = arith.constant dense<0xFF800000> : vector<2x6xf32>
    %127 = vector.multi_reduction <maximumf>, %126, %cst_50 [1] : vector<2x6x6xf32> to vector<2x6xf32>
    %128 = vector.shape_cast %127 : vector<2x6xf32> to vector<2x1x6xf32>
    %129 = vector.shape_cast %128 : vector<2x1x6xf32> to vector<2x6xf32>
    %130 = vector.broadcast %128 : vector<2x1x6xf32> to vector<2x6x6xf32>
    %131 = arith.subf %126, %130 : vector<2x6x6xf32>
    %132 = math.exp %131 : vector<2x6x6xf32>
    %cst_51 = arith.constant dense<0.000000e+00> : vector<2x6xf32>
    %133 = vector.multi_reduction <add>, %132, %cst_51 [1] : vector<2x6x6xf32> to vector<2x6xf32>
    %134 = math.log %133 : vector<2x6xf32>
    %135 = arith.addf %129, %134 : vector<2x6xf32>
    %136 = vector.extract_strided_slice %104 {offsets = [0, 4, 0], sizes = [2, 1, 6], strides = [1, 1, 1]} : vector<2x6x6xf32> to vector<2x1x6xf32>
    %137 = vector.shape_cast %136 : vector<2x1x6xf32> to vector<2x6xf32>
    %c0_i32_52 = arith.constant 0 : i32
    %138 = arith.cmpi eq, %101, %c0_i32_52 : i32
    %cst_53 = arith.constant 0.000000e+00 : f32
    %139 = vector.broadcast %cst_53 : f32 to vector<2x1xf32>
    %140 = arith.cmpf ogt, %110, %139 : vector<2x1xf32>
    %141 = vector.shape_cast %140 : vector<2x1xi1> to vector<2x1xi1>
    %142 = vector.broadcast %141 : vector<2x1xi1> to vector<2x6xi1>
    %143 = arith.select %142, %135, %99 : vector<2x6xi1>, vector<2x6xf32>
    %144 = arith.select %138, %137, %143 : vector<2x6xf32>
    %c3_i32 = arith.constant 3 : i32
    %c8_i32_54 = arith.constant 8 : i32
    %145 = arith.muli %arg0, %c8_i32_54 : i32
    %146 = arith.addi %145, %c3_i32 : i32
    %147 = arith.index_cast %c3_i32 : i32 to index
    %c0_55 = arith.constant 0 : index
    %c0_56 = arith.constant 0 : index
    %c0_57 = arith.constant 0 : index
    %148 = vector.load %arg1[%147, %c0_55, %c0_56, %c0_57] : memref<8x2x6x6xf32, #tpu.memory_space<vmem>>, vector<1x2x6x6xf32>
    %149 = vector.shape_cast %148 : vector<1x2x6x6xf32> to vector<2x6x6xf32>
    %150 = arith.index_cast %c3_i32 : i32 to index
    %c0_58 = arith.constant 0 : index
    %c0_59 = arith.constant 0 : index
    %151 = vector.load %arg2[%150, %c0_58, %c0_59] : memref<8x2x1xi32, #tpu.memory_space<vmem>>, vector<1x2x1xi32>
    %152 = vector.shape_cast %151 : vector<1x2x1xi32> to vector<2x1xi32>
    %153 = arith.index_cast %c3_i32 : i32 to index
    %c0_60 = arith.constant 0 : index
    %c0_61 = arith.constant 0 : index
    %154 = vector.load %arg3[%153, %c0_60, %c0_61] : memref<8x2x1xf32, #tpu.memory_space<vmem>>, vector<1x2x1xf32>
    %155 = vector.shape_cast %154 : vector<1x2x1xf32> to vector<2x1xf32>
    %156 = vector.shape_cast %152 : vector<2x1xi32> to vector<2x1x1xi32>
    %157 = vector.broadcast %156 : vector<2x1x1xi32> to vector<2x6x6xi32>
    %158 = arith.cmpi eq, %7, %157 : vector<2x6x6xi32>
    %cst_62 = arith.constant 0.000000e+00 : f32
    %159 = vector.broadcast %cst_62 : f32 to vector<2x6x6xf32>
    %160 = arith.select %158, %149, %159 : vector<2x6x6xi1>, vector<2x6x6xf32>
    %cst_63 = arith.constant dense<0.000000e+00> : vector<2x6xf32>
    %161 = vector.multi_reduction <add>, %160, %cst_63 [2] : vector<2x6x6xf32> to vector<2x6xf32>
    %cst_64 = arith.constant dense<0.000000e+00> : vector<2xf32>
    %162 = vector.multi_reduction <add>, %161, %cst_64 [1] : vector<2x6xf32> to vector<2xf32>
    %163 = vector.shape_cast %162 : vector<2xf32> to vector<2x1xf32>
    %cst_65 = arith.constant 0.000000e+00 : f32
    %164 = vector.broadcast %cst_65 : f32 to vector<2x1xf32>
    %165 = arith.cmpf ogt, %155, %164 : vector<2x1xf32>
    %cst_66 = arith.constant 0.000000e+00 : f32
    %166 = vector.broadcast %cst_66 : f32 to vector<2x1xf32>
    %167 = arith.select %165, %163, %166 : vector<2x1xi1>, vector<2x1xf32>
    %168 = arith.addf %123, %167 : vector<2x1xf32>
    %169 = vector.shape_cast %144 : vector<2x6xf32> to vector<2x6x1xf32>
    %170 = vector.broadcast %169 : vector<2x6x1xf32> to vector<2x6x6xf32>
    %171 = arith.addf %149, %170 : vector<2x6x6xf32>
    %cst_67 = arith.constant dense<0xFF800000> : vector<2x6xf32>
    %172 = vector.multi_reduction <maximumf>, %171, %cst_67 [1] : vector<2x6x6xf32> to vector<2x6xf32>
    %173 = vector.shape_cast %172 : vector<2x6xf32> to vector<2x1x6xf32>
    %174 = vector.shape_cast %173 : vector<2x1x6xf32> to vector<2x6xf32>
    %175 = vector.broadcast %173 : vector<2x1x6xf32> to vector<2x6x6xf32>
    %176 = arith.subf %171, %175 : vector<2x6x6xf32>
    %177 = math.exp %176 : vector<2x6x6xf32>
    %cst_68 = arith.constant dense<0.000000e+00> : vector<2x6xf32>
    %178 = vector.multi_reduction <add>, %177, %cst_68 [1] : vector<2x6x6xf32> to vector<2x6xf32>
    %179 = math.log %178 : vector<2x6xf32>
    %180 = arith.addf %174, %179 : vector<2x6xf32>
    %181 = vector.extract_strided_slice %149 {offsets = [0, 4, 0], sizes = [2, 1, 6], strides = [1, 1, 1]} : vector<2x6x6xf32> to vector<2x1x6xf32>
    %182 = vector.shape_cast %181 : vector<2x1x6xf32> to vector<2x6xf32>
    %c0_i32_69 = arith.constant 0 : i32
    %183 = arith.cmpi eq, %146, %c0_i32_69 : i32
    %cst_70 = arith.constant 0.000000e+00 : f32
    %184 = vector.broadcast %cst_70 : f32 to vector<2x1xf32>
    %185 = arith.cmpf ogt, %155, %184 : vector<2x1xf32>
    %186 = vector.shape_cast %185 : vector<2x1xi1> to vector<2x1xi1>
    %187 = vector.broadcast %186 : vector<2x1xi1> to vector<2x6xi1>
    %188 = arith.select %187, %180, %144 : vector<2x6xi1>, vector<2x6xf32>
    %189 = arith.select %183, %182, %188 : vector<2x6xf32>
    %c4_i32 = arith.constant 4 : i32
    %c8_i32_71 = arith.constant 8 : i32
    %190 = arith.muli %arg0, %c8_i32_71 : i32
    %191 = arith.addi %190, %c4_i32 : i32
    %192 = arith.index_cast %c4_i32 : i32 to index
    %c0_72 = arith.constant 0 : index
    %c0_73 = arith.constant 0 : index
    %c0_74 = arith.constant 0 : index
    %193 = vector.load %arg1[%192, %c0_72, %c0_73, %c0_74] : memref<8x2x6x6xf32, #tpu.memory_space<vmem>>, vector<1x2x6x6xf32>
    %194 = vector.shape_cast %193 : vector<1x2x6x6xf32> to vector<2x6x6xf32>
    %195 = arith.index_cast %c4_i32 : i32 to index
    %c0_75 = arith.constant 0 : index
    %c0_76 = arith.constant 0 : index
    %196 = vector.load %arg2[%195, %c0_75, %c0_76] : memref<8x2x1xi32, #tpu.memory_space<vmem>>, vector<1x2x1xi32>
    %197 = vector.shape_cast %196 : vector<1x2x1xi32> to vector<2x1xi32>
    %198 = arith.index_cast %c4_i32 : i32 to index
    %c0_77 = arith.constant 0 : index
    %c0_78 = arith.constant 0 : index
    %199 = vector.load %arg3[%198, %c0_77, %c0_78] : memref<8x2x1xf32, #tpu.memory_space<vmem>>, vector<1x2x1xf32>
    %200 = vector.shape_cast %199 : vector<1x2x1xf32> to vector<2x1xf32>
    %201 = vector.shape_cast %197 : vector<2x1xi32> to vector<2x1x1xi32>
    %202 = vector.broadcast %201 : vector<2x1x1xi32> to vector<2x6x6xi32>
    %203 = arith.cmpi eq, %7, %202 : vector<2x6x6xi32>
    %cst_79 = arith.constant 0.000000e+00 : f32
    %204 = vector.broadcast %cst_79 : f32 to vector<2x6x6xf32>
    %205 = arith.select %203, %194, %204 : vector<2x6x6xi1>, vector<2x6x6xf32>
    %cst_80 = arith.constant dense<0.000000e+00> : vector<2x6xf32>
    %206 = vector.multi_reduction <add>, %205, %cst_80 [2] : vector<2x6x6xf32> to vector<2x6xf32>
    %cst_81 = arith.constant dense<0.000000e+00> : vector<2xf32>
    %207 = vector.multi_reduction <add>, %206, %cst_81 [1] : vector<2x6xf32> to vector<2xf32>
    %208 = vector.shape_cast %207 : vector<2xf32> to vector<2x1xf32>
    %cst_82 = arith.constant 0.000000e+00 : f32
    %209 = vector.broadcast %cst_82 : f32 to vector<2x1xf32>
    %210 = arith.cmpf ogt, %200, %209 : vector<2x1xf32>
    %cst_83 = arith.constant 0.000000e+00 : f32
    %211 = vector.broadcast %cst_83 : f32 to vector<2x1xf32>
    %212 = arith.select %210, %208, %211 : vector<2x1xi1>, vector<2x1xf32>
    %213 = arith.addf %168, %212 : vector<2x1xf32>
    %214 = vector.shape_cast %189 : vector<2x6xf32> to vector<2x6x1xf32>
    %215 = vector.broadcast %214 : vector<2x6x1xf32> to vector<2x6x6xf32>
    %216 = arith.addf %194, %215 : vector<2x6x6xf32>
    %cst_84 = arith.constant dense<0xFF800000> : vector<2x6xf32>
    %217 = vector.multi_reduction <maximumf>, %216, %cst_84 [1] : vector<2x6x6xf32> to vector<2x6xf32>
    %218 = vector.shape_cast %217 : vector<2x6xf32> to vector<2x1x6xf32>
    %219 = vector.shape_cast %218 : vector<2x1x6xf32> to vector<2x6xf32>
    %220 = vector.broadcast %218 : vector<2x1x6xf32> to vector<2x6x6xf32>
    %221 = arith.subf %216, %220 : vector<2x6x6xf32>
    %222 = math.exp %221 : vector<2x6x6xf32>
    %cst_85 = arith.constant dense<0.000000e+00> : vector<2x6xf32>
    %223 = vector.multi_reduction <add>, %222, %cst_85 [1] : vector<2x6x6xf32> to vector<2x6xf32>
    %224 = math.log %223 : vector<2x6xf32>
    %225 = arith.addf %219, %224 : vector<2x6xf32>
    %226 = vector.extract_strided_slice %194 {offsets = [0, 4, 0], sizes = [2, 1, 6], strides = [1, 1, 1]} : vector<2x6x6xf32> to vector<2x1x6xf32>
    %227 = vector.shape_cast %226 : vector<2x1x6xf32> to vector<2x6xf32>
    %c0_i32_86 = arith.constant 0 : i32
    %228 = arith.cmpi eq, %191, %c0_i32_86 : i32
    %cst_87 = arith.constant 0.000000e+00 : f32
    %229 = vector.broadcast %cst_87 : f32 to vector<2x1xf32>
    %230 = arith.cmpf ogt, %200, %229 : vector<2x1xf32>
    %231 = vector.shape_cast %230 : vector<2x1xi1> to vector<2x1xi1>
    %232 = vector.broadcast %231 : vector<2x1xi1> to vector<2x6xi1>
    %233 = arith.select %232, %225, %189 : vector<2x6xi1>, vector<2x6xf32>
    %234 = arith.select %228, %227, %233 : vector<2x6xf32>
    %c5_i32 = arith.constant 5 : i32
    %c8_i32_88 = arith.constant 8 : i32
    %235 = arith.muli %arg0, %c8_i32_88 : i32
    %236 = arith.addi %235, %c5_i32 : i32
    %237 = arith.index_cast %c5_i32 : i32 to index
    %c0_89 = arith.constant 0 : index
    %c0_90 = arith.constant 0 : index
    %c0_91 = arith.constant 0 : index
    %238 = vector.load %arg1[%237, %c0_89, %c0_90, %c0_91] : memref<8x2x6x6xf32, #tpu.memory_space<vmem>>, vector<1x2x6x6xf32>
    %239 = vector.shape_cast %238 : vector<1x2x6x6xf32> to vector<2x6x6xf32>
    %240 = arith.index_cast %c5_i32 : i32 to index
    %c0_92 = arith.constant 0 : index
    %c0_93 = arith.constant 0 : index
    %241 = vector.load %arg2[%240, %c0_92, %c0_93] : memref<8x2x1xi32, #tpu.memory_space<vmem>>, vector<1x2x1xi32>
    %242 = vector.shape_cast %241 : vector<1x2x1xi32> to vector<2x1xi32>
    %243 = arith.index_cast %c5_i32 : i32 to index
    %c0_94 = arith.constant 0 : index
    %c0_95 = arith.constant 0 : index
    %244 = vector.load %arg3[%243, %c0_94, %c0_95] : memref<8x2x1xf32, #tpu.memory_space<vmem>>, vector<1x2x1xf32>
    %245 = vector.shape_cast %244 : vector<1x2x1xf32> to vector<2x1xf32>
    %246 = vector.shape_cast %242 : vector<2x1xi32> to vector<2x1x1xi32>
    %247 = vector.broadcast %246 : vector<2x1x1xi32> to vector<2x6x6xi32>
    %248 = arith.cmpi eq, %7, %247 : vector<2x6x6xi32>
    %cst_96 = arith.constant 0.000000e+00 : f32
    %249 = vector.broadcast %cst_96 : f32 to vector<2x6x6xf32>
    %250 = arith.select %248, %239, %249 : vector<2x6x6xi1>, vector<2x6x6xf32>
    %cst_97 = arith.constant dense<0.000000e+00> : vector<2x6xf32>
    %251 = vector.multi_reduction <add>, %250, %cst_97 [2] : vector<2x6x6xf32> to vector<2x6xf32>
    %cst_98 = arith.constant dense<0.000000e+00> : vector<2xf32>
    %252 = vector.multi_reduction <add>, %251, %cst_98 [1] : vector<2x6xf32> to vector<2xf32>
    %253 = vector.shape_cast %252 : vector<2xf32> to vector<2x1xf32>
    %cst_99 = arith.constant 0.000000e+00 : f32
    %254 = vector.broadcast %cst_99 : f32 to vector<2x1xf32>
    %255 = arith.cmpf ogt, %245, %254 : vector<2x1xf32>
    %cst_100 = arith.constant 0.000000e+00 : f32
    %256 = vector.broadcast %cst_100 : f32 to vector<2x1xf32>
    %257 = arith.select %255, %253, %256 : vector<2x1xi1>, vector<2x1xf32>
    %258 = arith.addf %213, %257 : vector<2x1xf32>
    %259 = vector.shape_cast %234 : vector<2x6xf32> to vector<2x6x1xf32>
    %260 = vector.broadcast %259 : vector<2x6x1xf32> to vector<2x6x6xf32>
    %261 = arith.addf %239, %260 : vector<2x6x6xf32>
    %cst_101 = arith.constant dense<0xFF800000> : vector<2x6xf32>
    %262 = vector.multi_reduction <maximumf>, %261, %cst_101 [1] : vector<2x6x6xf32> to vector<2x6xf32>
    %263 = vector.shape_cast %262 : vector<2x6xf32> to vector<2x1x6xf32>
    %264 = vector.shape_cast %263 : vector<2x1x6xf32> to vector<2x6xf32>
    %265 = vector.broadcast %263 : vector<2x1x6xf32> to vector<2x6x6xf32>
    %266 = arith.subf %261, %265 : vector<2x6x6xf32>
    %267 = math.exp %266 : vector<2x6x6xf32>
    %cst_102 = arith.constant dense<0.000000e+00> : vector<2x6xf32>
    %268 = vector.multi_reduction <add>, %267, %cst_102 [1] : vector<2x6x6xf32> to vector<2x6xf32>
    %269 = math.log %268 : vector<2x6xf32>
    %270 = arith.addf %264, %269 : vector<2x6xf32>
    %271 = vector.extract_strided_slice %239 {offsets = [0, 4, 0], sizes = [2, 1, 6], strides = [1, 1, 1]} : vector<2x6x6xf32> to vector<2x1x6xf32>
    %272 = vector.shape_cast %271 : vector<2x1x6xf32> to vector<2x6xf32>
    %c0_i32_103 = arith.constant 0 : i32
    %273 = arith.cmpi eq, %236, %c0_i32_103 : i32
    %cst_104 = arith.constant 0.000000e+00 : f32
    %274 = vector.broadcast %cst_104 : f32 to vector<2x1xf32>
    %275 = arith.cmpf ogt, %245, %274 : vector<2x1xf32>
    %276 = vector.shape_cast %275 : vector<2x1xi1> to vector<2x1xi1>
    %277 = vector.broadcast %276 : vector<2x1xi1> to vector<2x6xi1>
    %278 = arith.select %277, %270, %234 : vector<2x6xi1>, vector<2x6xf32>
    %279 = arith.select %273, %272, %278 : vector<2x6xf32>
    %c6_i32_105 = arith.constant 6 : i32
    %c8_i32_106 = arith.constant 8 : i32
    %280 = arith.muli %arg0, %c8_i32_106 : i32
    %281 = arith.addi %280, %c6_i32_105 : i32
    %282 = arith.index_cast %c6_i32_105 : i32 to index
    %c0_107 = arith.constant 0 : index
    %c0_108 = arith.constant 0 : index
    %c0_109 = arith.constant 0 : index
    %283 = vector.load %arg1[%282, %c0_107, %c0_108, %c0_109] : memref<8x2x6x6xf32, #tpu.memory_space<vmem>>, vector<1x2x6x6xf32>
    %284 = vector.shape_cast %283 : vector<1x2x6x6xf32> to vector<2x6x6xf32>
    %285 = arith.index_cast %c6_i32_105 : i32 to index
    %c0_110 = arith.constant 0 : index
    %c0_111 = arith.constant 0 : index
    %286 = vector.load %arg2[%285, %c0_110, %c0_111] : memref<8x2x1xi32, #tpu.memory_space<vmem>>, vector<1x2x1xi32>
    %287 = vector.shape_cast %286 : vector<1x2x1xi32> to vector<2x1xi32>
    %288 = arith.index_cast %c6_i32_105 : i32 to index
    %c0_112 = arith.constant 0 : index
    %c0_113 = arith.constant 0 : index
    %289 = vector.load %arg3[%288, %c0_112, %c0_113] : memref<8x2x1xf32, #tpu.memory_space<vmem>>, vector<1x2x1xf32>
    %290 = vector.shape_cast %289 : vector<1x2x1xf32> to vector<2x1xf32>
    %291 = vector.shape_cast %287 : vector<2x1xi32> to vector<2x1x1xi32>
    %292 = vector.broadcast %291 : vector<2x1x1xi32> to vector<2x6x6xi32>
    %293 = arith.cmpi eq, %7, %292 : vector<2x6x6xi32>
    %cst_114 = arith.constant 0.000000e+00 : f32
    %294 = vector.broadcast %cst_114 : f32 to vector<2x6x6xf32>
    %295 = arith.select %293, %284, %294 : vector<2x6x6xi1>, vector<2x6x6xf32>
    %cst_115 = arith.constant dense<0.000000e+00> : vector<2x6xf32>
    %296 = vector.multi_reduction <add>, %295, %cst_115 [2] : vector<2x6x6xf32> to vector<2x6xf32>
    %cst_116 = arith.constant dense<0.000000e+00> : vector<2xf32>
    %297 = vector.multi_reduction <add>, %296, %cst_116 [1] : vector<2x6xf32> to vector<2xf32>
    %298 = vector.shape_cast %297 : vector<2xf32> to vector<2x1xf32>
    %cst_117 = arith.constant 0.000000e+00 : f32
    %299 = vector.broadcast %cst_117 : f32 to vector<2x1xf32>
    %300 = arith.cmpf ogt, %290, %299 : vector<2x1xf32>
    %cst_118 = arith.constant 0.000000e+00 : f32
    %301 = vector.broadcast %cst_118 : f32 to vector<2x1xf32>
    %302 = arith.select %300, %298, %301 : vector<2x1xi1>, vector<2x1xf32>
    %303 = arith.addf %258, %302 : vector<2x1xf32>
    %304 = vector.shape_cast %279 : vector<2x6xf32> to vector<2x6x1xf32>
    %305 = vector.broadcast %304 : vector<2x6x1xf32> to vector<2x6x6xf32>
    %306 = arith.addf %284, %305 : vector<2x6x6xf32>
    %cst_119 = arith.constant dense<0xFF800000> : vector<2x6xf32>
    %307 = vector.multi_reduction <maximumf>, %306, %cst_119 [1] : vector<2x6x6xf32> to vector<2x6xf32>
    %308 = vector.shape_cast %307 : vector<2x6xf32> to vector<2x1x6xf32>
    %309 = vector.shape_cast %308 : vector<2x1x6xf32> to vector<2x6xf32>
    %310 = vector.broadcast %308 : vector<2x1x6xf32> to vector<2x6x6xf32>
    %311 = arith.subf %306, %310 : vector<2x6x6xf32>
    %312 = math.exp %311 : vector<2x6x6xf32>
    %cst_120 = arith.constant dense<0.000000e+00> : vector<2x6xf32>
    %313 = vector.multi_reduction <add>, %312, %cst_120 [1] : vector<2x6x6xf32> to vector<2x6xf32>
    %314 = math.log %313 : vector<2x6xf32>
    %315 = arith.addf %309, %314 : vector<2x6xf32>
    %316 = vector.extract_strided_slice %284 {offsets = [0, 4, 0], sizes = [2, 1, 6], strides = [1, 1, 1]} : vector<2x6x6xf32> to vector<2x1x6xf32>
    %317 = vector.shape_cast %316 : vector<2x1x6xf32> to vector<2x6xf32>
    %c0_i32_121 = arith.constant 0 : i32
    %318 = arith.cmpi eq, %281, %c0_i32_121 : i32
    %cst_122 = arith.constant 0.000000e+00 : f32
    %319 = vector.broadcast %cst_122 : f32 to vector<2x1xf32>
    %320 = arith.cmpf ogt, %290, %319 : vector<2x1xf32>
    %321 = vector.shape_cast %320 : vector<2x1xi1> to vector<2x1xi1>
    %322 = vector.broadcast %321 : vector<2x1xi1> to vector<2x6xi1>
    %323 = arith.select %322, %315, %279 : vector<2x6xi1>, vector<2x6xf32>
    %324 = arith.select %318, %317, %323 : vector<2x6xf32>
    %c7_i32 = arith.constant 7 : i32
    %c8_i32_123 = arith.constant 8 : i32
    %325 = arith.muli %arg0, %c8_i32_123 : i32
    %326 = arith.addi %325, %c7_i32 : i32
    %327 = arith.index_cast %c7_i32 : i32 to index
    %c0_124 = arith.constant 0 : index
    %c0_125 = arith.constant 0 : index
    %c0_126 = arith.constant 0 : index
    %328 = vector.load %arg1[%327, %c0_124, %c0_125, %c0_126] : memref<8x2x6x6xf32, #tpu.memory_space<vmem>>, vector<1x2x6x6xf32>
    %329 = vector.shape_cast %328 : vector<1x2x6x6xf32> to vector<2x6x6xf32>
    %330 = arith.index_cast %c7_i32 : i32 to index
    %c0_127 = arith.constant 0 : index
    %c0_128 = arith.constant 0 : index
    %331 = vector.load %arg2[%330, %c0_127, %c0_128] : memref<8x2x1xi32, #tpu.memory_space<vmem>>, vector<1x2x1xi32>
    %332 = vector.shape_cast %331 : vector<1x2x1xi32> to vector<2x1xi32>
    %333 = arith.index_cast %c7_i32 : i32 to index
    %c0_129 = arith.constant 0 : index
    %c0_130 = arith.constant 0 : index
    %334 = vector.load %arg3[%333, %c0_129, %c0_130] : memref<8x2x1xf32, #tpu.memory_space<vmem>>, vector<1x2x1xf32>
    %335 = vector.shape_cast %334 : vector<1x2x1xf32> to vector<2x1xf32>
    %336 = vector.shape_cast %332 : vector<2x1xi32> to vector<2x1x1xi32>
    %337 = vector.broadcast %336 : vector<2x1x1xi32> to vector<2x6x6xi32>
    %338 = arith.cmpi eq, %7, %337 : vector<2x6x6xi32>
    %cst_131 = arith.constant 0.000000e+00 : f32
    %339 = vector.broadcast %cst_131 : f32 to vector<2x6x6xf32>
    %340 = arith.select %338, %329, %339 : vector<2x6x6xi1>, vector<2x6x6xf32>
    %cst_132 = arith.constant dense<0.000000e+00> : vector<2x6xf32>
    %341 = vector.multi_reduction <add>, %340, %cst_132 [2] : vector<2x6x6xf32> to vector<2x6xf32>
    %cst_133 = arith.constant dense<0.000000e+00> : vector<2xf32>
    %342 = vector.multi_reduction <add>, %341, %cst_133 [1] : vector<2x6xf32> to vector<2xf32>
    %343 = vector.shape_cast %342 : vector<2xf32> to vector<2x1xf32>
    %cst_134 = arith.constant 0.000000e+00 : f32
    %344 = vector.broadcast %cst_134 : f32 to vector<2x1xf32>
    %345 = arith.cmpf ogt, %335, %344 : vector<2x1xf32>
    %cst_135 = arith.constant 0.000000e+00 : f32
    %346 = vector.broadcast %cst_135 : f32 to vector<2x1xf32>
    %347 = arith.select %345, %343, %346 : vector<2x1xi1>, vector<2x1xf32>
    %348 = arith.addf %303, %347 : vector<2x1xf32>
    %349 = vector.shape_cast %324 : vector<2x6xf32> to vector<2x6x1xf32>
    %350 = vector.broadcast %349 : vector<2x6x1xf32> to vector<2x6x6xf32>
    %351 = arith.addf %329, %350 : vector<2x6x6xf32>
    %cst_136 = arith.constant dense<0xFF800000> : vector<2x6xf32>
    %352 = vector.multi_reduction <maximumf>, %351, %cst_136 [1] : vector<2x6x6xf32> to vector<2x6xf32>
    %353 = vector.shape_cast %352 : vector<2x6xf32> to vector<2x1x6xf32>
    %354 = vector.shape_cast %353 : vector<2x1x6xf32> to vector<2x6xf32>
    %355 = vector.broadcast %353 : vector<2x1x6xf32> to vector<2x6x6xf32>
    %356 = arith.subf %351, %355 : vector<2x6x6xf32>
    %357 = math.exp %356 : vector<2x6x6xf32>
    %cst_137 = arith.constant dense<0.000000e+00> : vector<2x6xf32>
    %358 = vector.multi_reduction <add>, %357, %cst_137 [1] : vector<2x6x6xf32> to vector<2x6xf32>
    %359 = math.log %358 : vector<2x6xf32>
    %360 = arith.addf %354, %359 : vector<2x6xf32>
    %361 = vector.extract_strided_slice %329 {offsets = [0, 4, 0], sizes = [2, 1, 6], strides = [1, 1, 1]} : vector<2x6x6xf32> to vector<2x1x6xf32>
    %362 = vector.shape_cast %361 : vector<2x1x6xf32> to vector<2x6xf32>
    %c0_i32_138 = arith.constant 0 : i32
    %363 = arith.cmpi eq, %326, %c0_i32_138 : i32
    %cst_139 = arith.constant 0.000000e+00 : f32
    %364 = vector.broadcast %cst_139 : f32 to vector<2x1xf32>
    %365 = arith.cmpf ogt, %335, %364 : vector<2x1xf32>
    %366 = vector.shape_cast %365 : vector<2x1xi1> to vector<2x1xi1>
    %367 = vector.broadcast %366 : vector<2x1xi1> to vector<2x6xi1>
    %368 = arith.select %367, %360, %324 : vector<2x6xi1>, vector<2x6xf32>
    %369 = arith.select %363, %362, %368 : vector<2x6xf32>
    %c8_i32_140 = arith.constant 8 : i32
    %c0_141 = arith.constant 0 : index
    %c0_142 = arith.constant 0 : index
    %370 = vector.load %arg6[%c0_141, %c0_142] : memref<2x6xf32, #tpu.memory_space<vmem>>, vector<2x6xf32>
    tpu.vector_store %arg6[%c0_141, %c0_142], %369 {strides = array<i32>} : memref<2x6xf32, #tpu.memory_space<vmem>>, vector<2x6xf32>,
    %c0_143 = arith.constant 0 : index
    %c0_144 = arith.constant 0 : index
    %371 = vector.load %arg7[%c0_143, %c0_144] : memref<2x1xf32, #tpu.memory_space<vmem>>, vector<2x1xf32>
    tpu.vector_store %arg7[%c0_143, %c0_144], %348 {strides = array<i32>} : memref<2x1xf32, #tpu.memory_space<vmem>>, vector<2x1xf32>,
    %c0_i32_145 = arith.constant 0 : i32
    %372 = arith.cmpi eq, %arg0, %c0_i32_145 : i32
    %373 = arith.extui %372 : i1 to i32
    %c0_i32_146 = arith.constant 0 : i32
    %374 = arith.cmpi ne, %373, %c0_i32_146 : i32
    scf.if %374 {
      %375 = vector.extract_strided_slice %369 {offsets = [0, 5], sizes = [2, 1], strides = [1, 1]} : vector<2x6xf32> to vector<2x1xf32>
      %376 = arith.subf %375, %348 : vector<2x1xf32>
      %c0_147 = arith.constant 0 : index
      %c0_148 = arith.constant 0 : index
      %377 = vector.load %arg4[%c0_147, %c0_148] : memref<2x1xf32, #tpu.memory_space<vmem>>, vector<2x1xf32>
      %cst_149 = arith.constant 0.000000e+00 : f32
      %378 = vector.broadcast %cst_149 : f32 to vector<2x1xf32>
      %379 = arith.cmpf ogt, %377, %378 : vector<2x1xf32>
      %cst_150 = arith.constant 0.000000e+00 : f32
      %380 = vector.broadcast %cst_150 : f32 to vector<2x1xf32>
      %381 = arith.select %379, %376, %380 : vector<2x1xi1>, vector<2x1xf32>
      %382 = vector.shape_cast %381 : vector<2x1xf32> to vector<1x2x1xf32>
      %cst_151 = arith.constant dense<0.000000e+00> : vector<1xf32>
      %383 = vector.multi_reduction <add>, %382, %cst_151 [1, 2] : vector<1x2x1xf32> to vector<1xf32>
      %384 = vector.shape_cast %383 : vector<1xf32> to vector<1x1x1xf32>
      %385 = vector.extract %384[0, 0, 0] : f32 from vector<1x1x1xf32>
      %cst_152 = arith.constant 5.000000e-01 : f32
      %386 = arith.mulf %385, %cst_152 : f32
      %387 = vector.broadcast %386 : f32 to vector<1x1xf32>
      %c0_153 = arith.constant 0 : index
      %c0_154 = arith.constant 0 : index
      %388 = vector.load %arg5[%c0_153, %c0_154] : memref<1x1xf32, #tpu.memory_space<vmem>>, vector<1x1xf32>
      tpu.vector_store %arg5[%c0_153, %c0_154], %387 {strides = array<i32>} : memref<1x1xf32, #tpu.memory_space<vmem>>, vector<1x1xf32>,
    } else {
    }
    return
  }
  func.func @transform_0(%arg0: i32) -> (i32, i32, i32, i32) {
    %c0_i32 = arith.constant 0 : i32
    %c0_i32_0 = arith.constant 0 : i32
    %c0_i32_1 = arith.constant 0 : i32
    %c0_i32_2 = arith.constant 0 : i32
    return %arg0, %c0_i32, %c0_i32_0, %c0_i32_1 : i32, i32, i32, i32
  }
  func.func @transform_1(%arg0: i32) -> (i32, i32, i32) {
    %c0_i32 = arith.constant 0 : i32
    %c0_i32_0 = arith.constant 0 : i32
    %c0_i32_1 = arith.constant 0 : i32
    return %arg0, %c0_i32, %c0_i32_0 : i32, i32, i32
  }
  func.func @transform_2(%arg0: i32) -> (i32, i32, i32) {
    %c0_i32 = arith.constant 0 : i32
    %c0_i32_0 = arith.constant 0 : i32
    %c0_i32_1 = arith.constant 0 : i32
    return %arg0, %c0_i32, %c0_i32_0 : i32, i32, i32
  }
  func.func @transform_3(%arg0: i32) -> (i32, i32) {
    %c0_i32 = arith.constant 0 : i32
    %c0_i32_0 = arith.constant 0 : i32
    %c0_i32_1 = arith.constant 0 : i32
    return %c0_i32, %c0_i32_0 : i32, i32
  }
  func.func @transform_4(%arg0: i32) -> (i32, i32) {
    %c0_i32 = arith.constant 0 : i32
    %c0_i32_0 = arith.constant 0 : i32
    %c0_i32_1 = arith.constant 0 : i32
    return %c0_i32, %c0_i32_0 : i32, i32
  }
}

</mosaic_0001>

<bundles_post_ra>
// kernel: tpu_custom_call.1
= control target key start
LH: loop header
LB: loop body
LE: loop exit
PB: predicated region body
PF: predicated region fallthrough
CT: control target
= control target key end

     0   :  { %v26_v0 = vlaneseq  ;;  %v1455_v4 = vmov 0   ;;  %s1925_s0 = inlined_call_operand.vmem [shape: f32[8,2,6,6], index: 0, kind: input, shape index: {}]   ;;  %s1926_s1 = inlined_call_operand.vmem [shape: s32[8,2,1], index: 1, kind: input, shape index: {}]   ;;  %s1927_s2 = inlined_call_operand.vmem [shape: f32[8,2,1], index: 2, kind: input, shape index: {}]   ;;  %s1928_s3 = inlined_call_operand.vmem [shape: f32[2,1], index: 3, kind: input, shape index: {}]   ;;  %s1929_s4 = inlined_call_operand.hbm [shape: f32[1,1], index: 4, kind: output, shape index: {}]  }
   0x1   :  { %v1489_v1 = vld [vmem:[%s1927_s2 + $0x2] sm:$0x3]  ;;  %1375 = vset.pattern.permute.xlu1 %v1455_v4  ;;  %1376 = vset.pattern.permute.xlu0 %v1455_v4 }
   0x2   :  { %v1491_v2 = vshrl.u32 %v26_v0, 7  ;;  %v29_v3 = vand.u32 127, %v26_v0  ;;  %vm252_vm0 = vcmp.gt.f32.partialorder %v1489_v1, 0.0  ;;  %v1499_v5 = vld [vmem:[%s1925_s0] sm:$0x3f] }
   0x3   :  { %v312_v6 = vsel %vm252_vm0, 1, %v1455_v4 }
   0x4   :  { %9 = vsyncpa [#allocation5], 0  ;;  %v1505_v7 = vsub.s32 4, %v1491_v2  ;;  %v30_v8 = vmul.u32 6, %v1491_v2  ;;  %v1509_v9 = vsub.s32 %v29_v3, %v1491_v2  ;;  %314 = vperm.xlu1 %1375, %v312_v6   ;;  %v1514_v10 = vld [vmem:[%s1925_s0 + $0x8] sm:$0x3f] }
   0x5   :  { %v1525_v14 = vld [vmem:[%s1925_s0 + $0x10] sm:$0x3f]  ;;  %vm79_vm1 = vcmask 46080   ;;  %v1531_v17 = vld [vmem:[%s1925_s0 + $0x18] sm:$0x3f]  ;;  %v323_v55 = vrot.slane %v1499_v5, 4 }
   0x6   :  { %v258_v11 = vrot.slane %v1499_v5, %v1505_v7  ;;  %v1518_v12 = vadd.s32 %v30_v8, %v29_v3  ;;  %v265_v13 = vrot.slane %v1514_v10, %v1505_v7  ;;  %v324_v56 = vrot.slane %v1514_v10, 3  ;;  %v1545_v3 = vld [vmem:[%s1927_s2 + $0x4] sm:$0x3]  ;;  %s1459_s25 = smov 123   ;;  %s1460_s28 = smov [#allocation4]  }
   0x7   :  { %vm96_vm2 = vcmask 1041409   ;;  %vm407_vm4 = vcmp.gt.f32.partialorder %v1545_v3, 0.0  ;;  %s1323_s29 = sshll.u32 %s1460_s28, 4  ;;  %s1324_s29 = int_to_ptr.vmem [resolvable:$true] %s1323_s29 }
   0x8   :  { %260 = vbcast.lane.b32.xlu0 %v258_v11, 256  ;;  %v325_v63 = vsel %vm96_vm2, %v324_v56, %v323_v55  ;;  %s1437_s6 = scalar_lea.vmem %s1324_s29, 32  ;;  %p1438_p1 = scmp.lt.s32.totalorder %s1324_s29, %s1324_s29 }
   0xc   :  { %267 = vbcast.lane.b32.xlu0 %v265_v13, 256 }
  0x7a   :  { %v261_v15 = vpop.permute.xlu0 %260 }
  0x7b   :  { %v269_v16 = vadd.f32 %v1525_v14, %v261_v15 }
  0x7d   :  { %v271_v18 = vsel %vm79_vm1, %v269_v16, -inf }
  0x7e   :  { %v272_v19 = vrot.slane %v271_v18, 4  ;;  %v268_v20 = vpop.permute.xlu0 %267 }
  0x7f   :  { %v270_v21 = vadd.f32 %v1531_v17, %v268_v20  ;;  %v315_v59 = vpop.permute.xlu1 %314  ;;  %v467_v20 = vsel %vm407_vm4, 1, %v1455_v4 }
  0x80   :  { %v273_v22 = vmax.f32 %v271_v18, %v272_v19  ;;  %vm316_vm3 = vcmp.eq.s32.totalorder %v315_v59, 1 }
  0x81   :  { %v278_v23 = vsel %vm79_vm1, %v270_v21, -inf }
  0x82   :  { %v274_v24 = vrot.slane %v273_v22, 2  ;;  %v279_v25 = vrot.slane %v278_v23, 4 }
  0x84   :  { %v275_v26 = vmax.f32 %v273_v22, %v274_v24  ;;  %v280_v27 = vmax.f32 %v278_v23, %v279_v25  ;;  %v1562_v22 = vld [vmem:[%s1925_s0 + $0x20] sm:$0x3f] }
  0x86   :  { %v276_v28 = vrot.slane %v275_v26, 1  ;;  %v281_v29 = vrot.slane %v280_v27, 2 }
  0x88   :  { %v277_v30 = vmax.f32 %v275_v26, %v276_v28  ;;  %v282_v31 = vmax.f32 %v280_v27, %v281_v29 }
  0x8a   :  { %v285_v32 = vsub.f32 %v269_v16, %v277_v30  ;;  %v283_v33 = vrot.slane %v282_v31, 1 }
  0x8c   :  { %v287_v34 = vmul.f32 1.442695, %v285_v32  ;;  %v284_v35 = vmax.f32 %v282_v31, %v283_v33 }
  0x8e   :  { %1377 = vpow2.f32 %v287_v34  ;;  %v286_v36 = vsub.f32 %v270_v21, %v284_v35  ;;  %v1557_v21 = vld [vmem:[%s1925_s0 + $0x28] sm:$0x3f] }
  0x90   :  { %v289_v37 = vmul.f32 1.442695, %v286_v36 }
  0x92   :  { %1379 = vpow2.f32 %v289_v37 }
  0x9b   :  { %v1378_v38 = vpop.eup %1377 }
  0x9c   :  { %v291_v39 = vsel %vm79_vm1, %v1378_v38, 0.0 }
  0x9d   :  { %v292_v40 = vrot.slane %v291_v39, 4 }
  0x9f   :  { %v1380_v41 = vpop.eup %1379  ;;  %v293_v42 = vadd.f32 %v292_v40, %v291_v39 }
  0xa0   :  { %v298_v43 = vsel %vm79_vm1, %v1380_v41, 0.0 }
  0xa1   :  { %v294_v44 = vrot.slane %v293_v42, 2  ;;  %v299_v45 = vrot.slane %v298_v43, 4 }
  0xa3   :  { %v295_v46 = vadd.f32 %v294_v44, %v293_v42  ;;  %v300_v47 = vadd.f32 %v299_v45, %v298_v43 }
  0xa5   :  { %v296_v48 = vrot.slane %v295_v46, 1  ;;  %v301_v49 = vrot.slane %v300_v47, 2 }
  0xa7   :  { %v297_v50 = vadd.f32 %v296_v48, %v295_v46  ;;  %v302_v51 = vadd.f32 %v301_v49, %v300_v47 }
  0xa9   :  { %1381 = vlog2.f32 %v297_v50  ;;  %v303_v52 = vrot.slane %v302_v51, 1 }
  0xab   :  { %v304_v53 = vadd.f32 %v303_v52, %v302_v51 }
  0xad   :  { %1383 = vlog2.f32 %v304_v53 }
  0xb6   :  { %v1382_v54 = vpop.eup %1381 }
  0xb7   :  { %v306_v57 = vmul.f32 0.6931472, %v1382_v54 }
  0xb9   :  { %v309_v61 = vadd.f32 %v306_v57, %v277_v30 }
  0xba   :  { %v1384_v58 = vpop.eup %1383 }
  0xbb   :  { %v308_v60 = vmul.f32 0.6931472, %v1384_v58 }
  0xbd   :  { %v310_v62 = vadd.f32 %v308_v60, %v284_v35 }
  0xbf   :  { %v319_v0 = vsel %vm96_vm2, %v310_v62, %v309_v61 }
  0xc0   :  { %v327_v6 = vsel %vm316_vm3, %v319_v0, %v325_v63 }
  0xc1   :  { %v333_v8 = vrot.slane %v327_v6, 5  ;;  %v332_v11 = vrot.slane %v327_v6, 4 }
  0xc3   :  { %v420_v13 = vrot.slane %v333_v8, %v1505_v7  ;;  %v479_v15 = vrot.slane %v333_v8, 3  ;;  %v413_v16 = vrot.slane %v332_v11, %v1505_v7  ;;  %v478_v18 = vrot.slane %v332_v11, 4 }
  0xc5   :  { %422 = vbcast.lane.b32.xlu0 %v420_v13, 256  ;;  %415 = vbcast.lane.b32.xlu1 %v413_v16, 256  ;;  %v480_v19 = vsel %vm96_vm2, %v479_v15, %v478_v18  ;;  %v1574_v15 = vld [vmem:[%s1927_s2 + $0x6] sm:$0x3] }
  0xc6   :  { %vm562_vm6 = vcmp.gt.f32.partialorder %v1574_v15, 0.0 }
  0xc9   :  { %469 = vperm.xlu1 %1375, %v467_v20  }
 0x137   :  { %v423_v23 = vpop.permute.xlu0 %422  ;;  %v416_v24 = vpop.permute.xlu1 %415 }
 0x138   :  { %v425_v25 = vadd.f32 %v1557_v21, %v423_v23  ;;  %v424_v26 = vadd.f32 %v1562_v22, %v416_v24 }
 0x13a   :  { %v433_v27 = vsel %vm79_vm1, %v425_v25, -inf  ;;  %v426_v28 = vsel %vm79_vm1, %v424_v26, -inf }
 0x13b   :  { %v434_v29 = vrot.slane %v433_v27, 4  ;;  %v427_v30 = vrot.slane %v426_v28, 4 }
 0x13d   :  { %v435_v31 = vmax.f32 %v433_v27, %v434_v29  ;;  %v428_v32 = vmax.f32 %v426_v28, %v427_v30  ;;  %v1582_v27 = vld [vmem:[%s1927_s2 + $0x8] sm:$0x3]  ;;  %v1595_v30 = vld [vmem:[%s1925_s0 + $0x38] sm:$0x3f] }
 0x13e   :  { %vm717_vm7 = vcmp.gt.f32.partialorder %v1582_v27, 0.0 }
 0x13f   :  { %v436_v33 = vrot.slane %v435_v31, 2  ;;  %v429_v34 = vrot.slane %v428_v32, 2  ;;  %v777_v29 = vsel %vm717_vm7, 1, %v1455_v4 }
 0x141   :  { %v437_v35 = vmax.f32 %v435_v31, %v436_v33  ;;  %v430_v36 = vmax.f32 %v428_v32, %v429_v34  ;;  %v1600_v31 = vld [vmem:[%s1925_s0 + $0x30] sm:$0x3f] }
 0x143   :  { %v438_v37 = vrot.slane %v437_v35, 1  ;;  %v431_v38 = vrot.slane %v430_v36, 1 }
 0x144   :  { %v470_v8 = vpop.permute.xlu1 %469 }
 0x145   :  { %v439_v39 = vmax.f32 %v437_v35, %v438_v37  ;;  %v432_v40 = vmax.f32 %v430_v36, %v431_v38  ;;  %vm471_vm5 = vcmp.eq.s32.totalorder %v470_v8, 1 }
 0x147   :  { %v441_v41 = vsub.f32 %v425_v25, %v439_v39  ;;  %v440_v42 = vsub.f32 %v424_v26, %v432_v40 }
 0x149   :  { %v444_v43 = vmul.f32 1.442695, %v441_v41  ;;  %v442_v44 = vmul.f32 1.442695, %v440_v42 }
 0x14b   :  { %1385 = vpow2.f32 %v444_v43 }
 0x14c   :  { %1387 = vpow2.f32 %v442_v44 }
 0x158   :  { %v1386_v45 = vpop.eup %1385 }
 0x159   :  { %v1388_v46 = vpop.eup %1387  ;;  %v453_v47 = vsel %vm79_vm1, %v1386_v45, 0.0 }
 0x15a   :  { %v454_v48 = vrot.slane %v453_v47, 4  ;;  %v446_v49 = vsel %vm79_vm1, %v1388_v46, 0.0 }
 0x15b   :  { %v447_v50 = vrot.slane %v446_v49, 4 }
 0x15c   :  { %v455_v51 = vadd.f32 %v454_v48, %v453_v47 }
 0x15d   :  { %v448_v52 = vadd.f32 %v447_v50, %v446_v49 }
 0x15e   :  { %v456_v53 = vrot.slane %v455_v51, 2 }
 0x15f   :  { %v449_v54 = vrot.slane %v448_v52, 2 }
 0x160   :  { %v457_v55 = vadd.f32 %v456_v53, %v455_v51 }
 0x161   :  { %v450_v56 = vadd.f32 %v449_v54, %v448_v52 }
 0x162   :  { %v458_v57 = vrot.slane %v457_v55, 1 }
 0x163   :  { %v451_v58 = vrot.slane %v450_v56, 1 }
 0x164   :  { %v459_v59 = vadd.f32 %v458_v57, %v457_v55 }
 0x165   :  { %v452_v60 = vadd.f32 %v451_v58, %v450_v56 }
 0x166   :  { %1389 = vlog2.f32 %v459_v59 }
 0x167   :  { %1391 = vlog2.f32 %v452_v60 }
 0x173   :  { %v1390_v61 = vpop.eup %1389 }
 0x174   :  { %v1392_v62 = vpop.eup %1391  ;;  %v463_v63 = vmul.f32 0.6931472, %v1390_v61 }
 0x175   :  { %v461_v0 = vmul.f32 0.6931472, %v1392_v62 }
 0x176   :  { %v465_v6 = vadd.f32 %v463_v63, %v439_v39 }
 0x177   :  { %v464_v11 = vadd.f32 %v461_v0, %v432_v40 }
 0x179   :  { %v474_v13 = vsel %vm96_vm2, %v465_v6, %v464_v11 }
 0x17a   :  { %v482_v16 = vsel %vm471_vm5, %v474_v13, %v480_v19  ;;  %v622_v19 = vsel %vm562_vm6, 1, %v1455_v4 }
 0x17b   :  { %v488_v18 = vrot.slane %v482_v16, 5  ;;  %v487_v20 = vrot.slane %v482_v16, 4 }
 0x17d   :  { %v575_v23 = vrot.slane %v488_v18, %v1505_v7  ;;  %v634_v24 = vrot.slane %v488_v18, 3  ;;  %v568_v25 = vrot.slane %v487_v20, %v1505_v7  ;;  %v633_v26 = vrot.slane %v487_v20, 4 }
 0x17f   :  { %577 = vbcast.lane.b32.xlu1 %v575_v23, 256  ;;  %570 = vbcast.lane.b32.xlu0 %v568_v25, 256  ;;  %v635_v28 = vsel %vm96_vm2, %v634_v24, %v633_v26 }
 0x183   :  { %624 = vperm.xlu0 %1376, %v622_v19  }
 0x187   :  { %779 = vperm.xlu0 %1376, %v777_v29  }
 0x1f1   :  { %v578_v32 = vpop.permute.xlu1 %577  ;;  %v571_v33 = vpop.permute.xlu0 %570 }
 0x1f2   :  { %v580_v34 = vadd.f32 %v1595_v30, %v578_v32  ;;  %v579_v35 = vadd.f32 %v1600_v31, %v571_v33 }
 0x1f4   :  { %v588_v36 = vsel %vm79_vm1, %v580_v34, -inf  ;;  %v581_v37 = vsel %vm79_vm1, %v579_v35, -inf }
 0x1f5   :  { %v589_v38 = vrot.slane %v588_v36, 4  ;;  %v582_v39 = vrot.slane %v581_v37, 4 }
 0x1f7   :  { %v590_v40 = vmax.f32 %v588_v36, %v589_v38  ;;  %v583_v41 = vmax.f32 %v581_v37, %v582_v39 }
 0x1f9   :  { %v591_v42 = vrot.slane %v590_v40, 2  ;;  %v584_v43 = vrot.slane %v583_v41, 2 }
 0x1fb   :  { %v592_v44 = vmax.f32 %v590_v40, %v591_v42  ;;  %v585_v45 = vmax.f32 %v583_v41, %v584_v43  ;;  %v1617_v40 = vld [vmem:[%s1925_s0 + $0x40] sm:$0x3f]  ;;  %v1623_v42 = vld [vmem:[%s1925_s0 + $0x48] sm:$0x3f] }
 0x1fd   :  { %v593_v46 = vrot.slane %v592_v44, 1  ;;  %v586_v47 = vrot.slane %v585_v45, 1 }
 0x1fe   :  { %v625_v26 = vpop.permute.xlu0 %624 }
 0x1ff   :  { %v594_v48 = vmax.f32 %v592_v44, %v593_v46  ;;  %v587_v49 = vmax.f32 %v585_v45, %v586_v47  ;;  %vm626_vm8 = vcmp.eq.s32.totalorder %v625_v26, 1 }
 0x201   :  { %v596_v50 = vsub.f32 %v580_v34, %v594_v48  ;;  %v595_v51 = vsub.f32 %v579_v35, %v587_v49 }
 0x203   :  { %v599_v52 = vmul.f32 1.442695, %v596_v50  ;;  %v597_v53 = vmul.f32 1.442695, %v595_v51 }
 0x205   :  { %1393 = vpow2.f32 %v599_v52 }
 0x206   :  { %1395 = vpow2.f32 %v597_v53 }
 0x212   :  { %v1394_v54 = vpop.eup %1393 }
 0x213   :  { %v1396_v55 = vpop.eup %1395  ;;  %v608_v56 = vsel %vm79_vm1, %v1394_v54, 0.0 }
 0x214   :  { %v609_v57 = vrot.slane %v608_v56, 4  ;;  %v601_v58 = vsel %vm79_vm1, %v1396_v55, 0.0 }
 0x215   :  { %v602_v59 = vrot.slane %v601_v58, 4 }
 0x216   :  { %v610_v60 = vadd.f32 %v609_v57, %v608_v56 }
 0x217   :  { %v603_v61 = vadd.f32 %v602_v59, %v601_v58 }
 0x218   :  { %v611_v62 = vrot.slane %v610_v60, 2 }
 0x219   :  { %v604_v63 = vrot.slane %v603_v61, 2 }
 0x21a   :  { %v612_v0 = vadd.f32 %v611_v62, %v610_v60 }
 0x21b   :  { %v605_v6 = vadd.f32 %v604_v63, %v603_v61 }
 0x21c   :  { %v613_v8 = vrot.slane %v612_v0, 1 }
 0x21d   :  { %v606_v11 = vrot.slane %v605_v6, 1 }
 0x21e   :  { %v614_v13 = vadd.f32 %v613_v8, %v612_v0 }
 0x21f   :  { %v607_v16 = vadd.f32 %v606_v11, %v605_v6 }
 0x220   :  { %1397 = vlog2.f32 %v614_v13 }
 0x221   :  { %1399 = vlog2.f32 %v607_v16 }
 0x22d   :  { %v1398_v18 = vpop.eup %1397 }
 0x22e   :  { %v1400_v20 = vpop.eup %1399  ;;  %v618_v23 = vmul.f32 0.6931472, %v1398_v18 }
 0x22f   :  { %v616_v24 = vmul.f32 0.6931472, %v1400_v20 }
 0x230   :  { %v620_v25 = vadd.f32 %v618_v23, %v594_v48 }
 0x231   :  { %v619_v19 = vadd.f32 %v616_v24, %v587_v49 }
 0x233   :  { %v629_v29 = vsel %vm96_vm2, %v620_v25, %v619_v19 }
 0x234   :  { %v637_v32 = vsel %vm626_vm8, %v629_v29, %v635_v28 }
 0x235   :  { %v642_v33 = vrot.slane %v637_v32, 4  ;;  %v643_v34 = vrot.slane %v637_v32, 5 }
 0x237   :  { %v723_v35 = vrot.slane %v642_v33, %v1505_v7  ;;  %v788_v36 = vrot.slane %v642_v33, 4  ;;  %v789_v37 = vrot.slane %v643_v34, 3  ;;  %v730_v39 = vrot.slane %v643_v34, %v1505_v7 }
 0x238   :  { %v1456_v33 = vmov 1966171168  }
 0x239   :  { %725 = vbcast.lane.b32.xlu1 %v723_v35, 256  ;;  %v1611_v38 = vsel %vm96_vm2, %v789_v37, %v788_v36  ;;  %v48_v34 = vunpack.c.l.s4 %v1456_v33 }
 0x23b   :  { %v49_v36 = vunpack.c.0.s8 %v48_v34 }
 0x23d   :  { %732 = vbcast.lane.b32.xlu1 %v730_v39, 256 }
 0x2ab   :  { %v726_v41 = vpop.permute.xlu1 %725 }
 0x2ac   :  { %v734_v28 = vadd.f32 %v1617_v40, %v726_v41 }
 0x2ae   :  { %v736_v43 = vsel %vm79_vm1, %v734_v28, -inf }
 0x2af   :  { %v737_v44 = vrot.slane %v736_v43, 4  ;;  %v733_v45 = vpop.permute.xlu1 %732 }
 0x2b0   :  { %v735_v46 = vadd.f32 %v1623_v42, %v733_v45 }
 0x2b1   :  { %v738_v47 = vmax.f32 %v736_v43, %v737_v44  ;;  %v780_v43 = vpop.permute.xlu0 %779 }
 0x2b2   :  { %v743_v48 = vsel %vm79_vm1, %v735_v46, -inf  ;;  %vm781_vm9 = vcmp.eq.s32.totalorder %v780_v43, 1 }
 0x2b3   :  { %v739_v49 = vrot.slane %v738_v47, 2  ;;  %v744_v50 = vrot.slane %v743_v48, 4 }
 0x2b5   :  { %v740_v51 = vmax.f32 %v738_v47, %v739_v49  ;;  %v745_v52 = vmax.f32 %v743_v48, %v744_v50  ;;  %v1640_v48 = vld [vmem:[%s1927_s2 + $0xa] sm:$0x3]  ;;  %v1643_v49 = vsub.s32 0, %v1491_v2 }
 0x2b6   :  { %vm872_vm10 = vcmp.gt.f32.partialorder %v1640_v48, 0.0 }
 0x2b7   :  { %v741_v53 = vrot.slane %v740_v51, 1  ;;  %v746_v54 = vrot.slane %v745_v52, 2 }
 0x2b9   :  { %v742_v55 = vmax.f32 %v740_v51, %v741_v53  ;;  %v747_v56 = vmax.f32 %v745_v52, %v746_v54 }
 0x2bb   :  { %v750_v57 = vsub.f32 %v734_v28, %v742_v55  ;;  %v748_v58 = vrot.slane %v747_v56, 1  ;;  %v1631_v28 = vsub.s32 %v49_v36, %v1491_v2  ;;  %v1356_v36 = vld.sshfl [vmem:[%s1926_s1 + $0xa] sm:$0x11 pattern:$0x75316420] }
 0x2bd   :  { %v752_v59 = vmul.f32 1.442695, %v750_v57  ;;  %v749_v60 = vmax.f32 %v747_v56, %v748_v58 }
 0x2bf   :  { %1401 = vpow2.f32 %v752_v59  ;;  %v751_v61 = vsub.f32 %v735_v46, %v749_v60  ;;  %v1331_v46 = vld.sshfl [vmem:[%s1926_s1] sm:$0x11 pattern:$0x75316420] }
 0x2c0   :  { %v53_v51 = vrot.slane %v1331_v46, %v1631_v28  ;;  %v46_v52 = vcombine.high %v1331_v46, %v1331_v46 }
 0x2c1   :  { %v754_v62 = vmul.f32 1.442695, %v751_v61 }
 0x2c2   :  { %v64_v59 = vrot.slane %v53_v51, %v1643_v49 }
 0x2c3   :  { %1403 = vpow2.f32 %v754_v62 }
 0x2cc   :  { %v1402_v63 = vpop.eup %1401 }
 0x2cd   :  { %v756_v0 = vsel %vm79_vm1, %v1402_v63, 0.0  ;;  %v932_v63 = vsel %vm872_vm10, 1, %v1455_v4 }
 0x2ce   :  { %v757_v6 = vrot.slane %v756_v0, 4 }
 0x2d0   :  { %v1404_v8 = vpop.eup %1403  ;;  %v758_v11 = vadd.f32 %v757_v6, %v756_v0  ;;  %v1341_v0 = vld.sshfl [vmem:[%s1926_s1 + $0x4] sm:$0x11 pattern:$0x75316420] }
 0x2d1   :  { %v763_v13 = vsel %vm79_vm1, %v1404_v8, 0.0  ;;  %v353_v8 = vcombine.high %v1341_v0, %v1341_v0 }
 0x2d2   :  { %v759_v16 = vrot.slane %v758_v11, 2  ;;  %v764_v18 = vrot.slane %v763_v13, 4 }
 0x2d4   :  { %v760_v20 = vadd.f32 %v759_v16, %v758_v11  ;;  %v765_v23 = vadd.f32 %v764_v18, %v763_v13  ;;  %v360_v16 = vrot.slane %v1341_v0, %v1631_v28  ;;  %v1346_v18 = vld.sshfl [vmem:[%s1926_s1 + $0x6] sm:$0x11 pattern:$0x75316420] }
 0x2d6   :  { %v761_v24 = vrot.slane %v760_v20, 1  ;;  %v766_v25 = vrot.slane %v765_v23, 2 }
 0x2d8   :  { %v762_v26 = vadd.f32 %v761_v24, %v760_v20  ;;  %v767_v19 = vadd.f32 %v766_v25, %v765_v23  ;;  %v367_v20 = vrot.slane %v353_v8, %v1631_v28  ;;  %v508_v23 = vcombine.high %v1346_v18, %v1346_v18 }
 0x2d9   :  { %v371_v25 = vrot.slane %v360_v16, %v1643_v49 }
 0x2da   :  { %1405 = vlog2.f32 %v762_v26  ;;  %v768_v29 = vrot.slane %v767_v19, 1  ;;  %v515_v26 = vrot.slane %v1346_v18, %v1631_v28 }
 0x2dc   :  { %v769_v32 = vadd.f32 %v768_v29, %v767_v19  ;;  %v1351_v19 = vld.sshfl [vmem:[%s1926_s1 + $0x8] sm:$0x11 pattern:$0x75316420]  ;;  %v375_v29 = vrot.slane %v367_v20, %v1643_v49  ;;  %v526_v33 = vrot.slane %v515_v26, %v1643_v49 }
 0x2dd   :  { %v670_v34 = vrot.slane %v1351_v19, %v1631_v28 }
 0x2de   :  { %1407 = vlog2.f32 %v769_v32  ;;  %v522_v32 = vrot.slane %v508_v23, %v1631_v28 }
 0x2e7   :  { %v1406_v35 = vpop.eup %1405 }
 0x2e8   :  { %v771_v37 = vmul.f32 0.6931472, %v1406_v35  ;;  %v663_v35 = vcombine.high %v1351_v19, %v1351_v19 }
 0x2ea   :  { %v774_v44 = vadd.f32 %v771_v37, %v742_v55  ;;  %v1336_v55 = vld.sshfl [vmem:[%s1926_s1 + $0x2] sm:$0x11 pattern:$0x75316420]  ;;  %v530_v37 = vrot.slane %v522_v32, %v1643_v49  ;;  %v677_v43 = vrot.slane %v663_v35, %v1631_v28 }
 0x2eb   :  { %v1408_v39 = vpop.eup %1407  ;;  %v198_v61 = vcombine.high %v1336_v55, %v1336_v55 }
 0x2ec   :  { %v773_v41 = vmul.f32 0.6931472, %v1408_v39  ;;  %v818_v39 = vcombine.high %v1356_v36, %v1356_v36 }
 0x2ed   :  { %v212_v13 = vrot.slane %v198_v61, %v1631_v28  ;;  %v1711_v61 = vld [vmem:[%s1925_s0 + $0x58] sm:$0x3f] }
 0x2ee   :  { %v775_v45 = vadd.f32 %v773_v41, %v749_v60  ;;  %v205_v60 = vrot.slane %v1336_v55, %v1631_v28  ;;  %v681_v41 = vrot.slane %v670_v34, %v1643_v49  ;;  %v832_v46 = vrot.slane %v818_v39, %v1631_v28 }
 0x2ef   :  { %v220_v24 = vrot.slane %v212_v13, %v1643_v49 }
 0x2f0   :  { %v784_v47 = vsel %vm96_vm2, %v775_v45, %v774_v44  ;;  %v216_v11 = vrot.slane %v205_v60, %v1643_v49  ;;  %v825_v44 = vrot.slane %v1356_v36, %v1631_v28  ;;  %v1361_v45 = vld.sshfl [vmem:[%s1926_s1 + $0xc] sm:$0x11 pattern:$0x75316420] }
 0x2f1   :  { %v792_v50 = vsel %vm781_vm9, %v784_v47, %v1611_v38  ;;  %v60_v38 = vrot.slane %v46_v52, %v1631_v28  ;;  %v980_v47 = vrot.slane %v1361_v45, %v1631_v28  ;;  %v973_v52 = vcombine.high %v1361_v45, %v1361_v45 }
 0x2f2   :  { %v798_v53 = vrot.slane %v792_v50, 5  ;;  %v797_v54 = vrot.slane %v792_v50, 4  ;;  %v685_v50 = vrot.slane %v677_v43, %v1643_v49  ;;  %v836_v51 = vrot.slane %v825_v44, %v1643_v49 }
 0x2f3   :  { %v68_v6 = vrot.slane %v60_v38, %v1643_v49  ;;  %v991_v55 = vrot.slane %v980_v47, %v1643_v49 }
 0x2f4   :  { %v885_v56 = vrot.slane %v798_v53, %v1505_v7  ;;  %v944_v57 = vrot.slane %v798_v53, 3  ;;  %v878_v58 = vrot.slane %v797_v54, %v1505_v7  ;;  %v943_v2 = vrot.slane %v797_v54, 4  ;;  %v1366_v53 = vld.sshfl [vmem:[%s1926_s1 + $0xe] sm:$0x11 pattern:$0x75316420] }
 0x2f5   :  { %v840_v54 = vrot.slane %v832_v46, %v1643_v49 }
 0x2f6   :  { %887 = vbcast.lane.b32.xlu0 %v885_v56, 256  ;;  %880 = vbcast.lane.b32.xlu1 %v878_v58, 256  ;;  %v1657_v62 = vsel %vm96_vm2, %v944_v57, %v943_v2  ;;  %v987_v56 = vrot.slane %v973_v52, %v1631_v28  ;;  %v1135_v57 = vrot.slane %v1366_v53, %v1631_v28 }
 0x2f7   :  { %v1128_v58 = vcombine.high %v1366_v53, %v1366_v53 }
 0x2f8   :  { %v995_v2 = vrot.slane %v987_v56, %v1643_v49 }
 0x2f9   :  { %v1142_v38 = vrot.slane %v1128_v58, %v1631_v28 }
 0x2fa   :  { %934 = vperm.xlu1 %1375, %v932_v63   ;;  %70 = vperm.xlu0 %1376, %v64_v59   ;;  %v1146_v59 = vrot.slane %v1135_v57, %v1643_v49  ;;  %v1716_v63 = vld [vmem:[%s1925_s0 + $0x50] sm:$0x3f] }
 0x2fb   :  { %v1150_v60 = vrot.slane %v1142_v38, %v1643_v49 }
 0x2fe   :  { %73 = vperm.xlu1 %1375, %v68_v6   ;;  %222 = vperm.xlu0 %1376, %v216_v11  }
 0x302   :  { %225 = vperm.xlu1 %1375, %v220_v24   ;;  %377 = vperm.xlu0 %1376, %v371_v25  }
 0x306   :  { %380 = vperm.xlu1 %1375, %v375_v29   ;;  %532 = vperm.xlu0 %1376, %v526_v33  }
 0x30a   :  { %535 = vperm.xlu1 %1375, %v530_v37   ;;  %687 = vperm.xlu0 %1376, %v681_v41  }
 0x30e   :  { %690 = vperm.xlu1 %1375, %v685_v50   ;;  %842 = vperm.xlu0 %1376, %v836_v51  }
 0x312   :  { %845 = vperm.xlu1 %1375, %v840_v54   ;;  %997 = vperm.xlu0 %1376, %v991_v55  }
 0x316   :  { %1000 = vperm.xlu1 %1375, %v995_v2   ;;  %1152 = vperm.xlu0 %1376, %v1146_v59  }
 0x31a   :  { %1155 = vperm.xlu1 %1375, %v1150_v60  }
 0x368   :  { %v888_v0 = vpop.permute.xlu0 %887  ;;  %v881_v6 = vpop.permute.xlu1 %880 }
 0x369   :  { %v890_v8 = vadd.f32 %v1711_v61, %v888_v0  ;;  %v889_v28 = vadd.f32 %v1716_v63, %v881_v6 }
 0x36b   :  { %v898_v11 = vsel %vm79_vm1, %v890_v8, -inf  ;;  %v891_v49 = vsel %vm79_vm1, %v889_v28, -inf }
 0x36c   :  { %v899_v13 = vrot.slane %v898_v11, 4  ;;  %v892_v16 = vrot.slane %v891_v49, 4 }
 0x36e   :  { %v900_v18 = vmax.f32 %v898_v11, %v899_v13  ;;  %v893_v20 = vmax.f32 %v891_v49, %v892_v16 }
 0x370   :  { %v901_v23 = vrot.slane %v900_v18, 2  ;;  %v894_v24 = vrot.slane %v893_v20, 2 }
 0x372   :  { %v902_v25 = vmax.f32 %v900_v18, %v901_v23  ;;  %v895_v26 = vmax.f32 %v893_v20, %v894_v24 }
 0x374   :  { %v903_v19 = vrot.slane %v902_v25, 1  ;;  %v896_v29 = vrot.slane %v895_v26, 1 }
 0x375   :  { %v1722_v32 = vpop.permute.xlu1 %934  ;;  %v71_v33 = vpop.permute.xlu0 %70 }
 0x376   :  { %v1724_v34 = vmax.f32 %v902_v25, %v903_v19  ;;  %v1726_v35 = vmax.f32 %v895_v26, %v896_v29  ;;  %vm75_vm11 = vcmp.eq.s32.totalorder %v1518_v12, %v71_v33  ;;  %vm936_vm9 = vcmp.eq.s32.totalorder %v1722_v32, 1 }
 0x377   :  { %v77_v36 = vsel %vm75_vm11, %v1499_v5, 0.0 }
 0x378   :  { %v906_v37 = vsub.f32 %v890_v8, %v1724_v34  ;;  %v905_v39 = vsub.f32 %v889_v28, %v1726_v35  ;;  %v80_v41 = vsel %vm79_vm1, %v77_v36, 0.0 }
 0x379   :  { %v74_v43 = vpop.permute.xlu1 %73  ;;  %v1733_v44 = vpop.permute.xlu0 %222  ;;  %81 = vadd.xlane.f32.xlu0 %v80_v41 }
 0x37a   :  { %v909_v45 = vmul.f32 1.442695, %v906_v37  ;;  %v907_v46 = vmul.f32 1.442695, %v905_v39  ;;  %vm76_vm12 = vcmp.eq.s32.totalorder %v1518_v12, %v74_v43  ;;  %vm227_vm13 = vcmp.eq.s32.totalorder %v1518_v12, %v1733_v44 }
 0x37b   :  { %v78_v47 = vsel %vm76_vm12, %v1514_v10, 0.0  ;;  %v229_v32 = vsel %vm227_vm13, %v1525_v14, 0.0 }
 0x37c   :  { %1409 = vpow2.f32 %v909_v45  ;;  %v83_v5 = vsel %vm79_vm1, %v78_v47, 0.0 }
 0x37d   :  { %1411 = vpow2.f32 %v907_v46  ;;  %v1740_v50 = vpop.permute.xlu1 %225  ;;  %v378_v51 = vpop.permute.xlu0 %377  ;;  %84 = vadd.xlane.f32.xlu1 %v83_v5 }
 0x37e   :  { %vm382_vm14 = vcmp.eq.s32.totalorder %v1518_v12, %v378_v51  ;;  %vm228_vm11 = vcmp.eq.s32.totalorder %v1518_v12, %v1740_v50 }
 0x37f   :  { %v384_v52 = vsel %vm382_vm14, %v1562_v22, 0.0 }
 0x380   :  { %v386_v53 = vsel %vm79_vm1, %v384_v52, 0.0 }
 0x381   :  { %v1745_v54 = vpop.permute.xlu1 %380  ;;  %v533_v55 = vpop.permute.xlu0 %532  ;;  %387 = vadd.xlane.f32.xlu1 %v386_v53  ;;  %v230_v53 = vsel %vm228_vm11, %v1531_v17, 0.0  ;;  %vm22_vm11 = vcmask 41984  }
 0x382   :  { %vm537_vm15 = vcmp.eq.s32.totalorder %v1518_v12, %v533_v55  ;;  %vm383_vm12 = vcmp.eq.s32.totalorder %v1518_v12, %v1745_v54  ;;  %v1357_v55 = vld [vmem:[%s1925_s0 + $0x60] sm:$0x3f]  ;;  %v234_v14 = vsel %vm79_vm1, %v230_v53, 0.0  ;;  %v1798_v54 = vld [vmem:[%s1925_s0 + $0x70] sm:$0x3f] }
 0x383   :  { %v539_v10 = vsel %vm537_vm15, %v1600_v31, 0.0 }
 0x384   :  { %v541_v56 = vsel %vm79_vm1, %v539_v10, 0.0  ;;  %v385_v10 = vsel %vm383_vm12, %v1557_v21, 0.0  ;;  %vm24_vm12 = vcmask 1024  }
 0x385   :  { %v1750_v57 = vpop.permute.xlu1 %535  ;;  %v688_v58 = vpop.permute.xlu0 %687  ;;  %542 = vadd.xlane.f32.xlu1 %v541_v56  ;;  %v389_v56 = vsel %vm79_vm1, %v385_v10, 0.0 }
 0x386   :  { %vm692_vm3 = vcmp.eq.s32.totalorder %v1518_v12, %v688_v58  ;;  %vm538_vm13 = vcmp.eq.s32.totalorder %v1518_v12, %v1750_v57 }
 0x387   :  { %v694_v22 = vsel %vm692_vm3, %v1617_v40, 0.0 }
 0x388   :  { %v696_v2 = vsel %vm79_vm1, %v694_v22, 0.0  ;;  %v540_v22 = vsel %vm538_vm13, %v1595_v30, 0.0  ;;  %v1358_v30 = vld [vmem:[%s1925_s0 + $0x68] sm:$0x3f] }
 0x389   :  { %v1410_v59 = vpop.eup %1409  ;;  %v1755_v38 = vpop.permute.xlu1 %690  ;;  %697 = vadd.xlane.f32.xlu1 %v696_v2  ;;  %v544_v57 = vsel %vm79_vm1, %v540_v22, 0.0 }
 0x38a   :  { %v843_v60 = vpop.permute.xlu0 %842  ;;  %v1412_v0 = vpop.eup %1411  ;;  %v918_v31 = vsel %vm79_vm1, %v1410_v59, 0.0  ;;  %vm693_vm3 = vcmp.eq.s32.totalorder %v1518_v12, %v1755_v38 }
 0x38b   :  { %vm847_vm5 = vcmp.eq.s32.totalorder %v1518_v12, %v843_v60  ;;  %v919_v6 = vrot.slane %v918_v31, 4  ;;  %v911_v8 = vsel %vm79_vm1, %v1412_v0, 0.0  ;;  %v695_v60 = vsel %vm693_vm3, %v1623_v42, 0.0  ;;  %v1820_v42 = vld [vmem:[%s1925_s0 + $0x78] sm:$0x3f] }
 0x38c   :  { %v849_v28 = vsel %vm847_vm5, %v1716_v63, 0.0  ;;  %v912_v11 = vrot.slane %v911_v8, 4  ;;  %v699_v0 = vsel %vm79_vm1, %v695_v60, 0.0 }
 0x38d   :  { %v920_v49 = vadd.f32 %v919_v6, %v918_v31  ;;  %v846_v40 = vpop.permute.xlu1 %845  ;;  %v851_v50 = vsel %vm79_vm1, %v849_v28, 0.0 }
 0x38e   :  { %v913_v13 = vadd.f32 %v912_v11, %v911_v8  ;;  %vm848_vm8 = vcmp.eq.s32.totalorder %v1518_v12, %v846_v40  ;;  %v1825_v8 = vld [vmem:[%s1927_s2 + $0xc] sm:$0x3] }
 0x38f   :  { %v921_v16 = vrot.slane %v920_v49, 2  ;;  %v1763_v18 = vsel %vm848_vm8, %v1711_v61, 0.0 }
 0x390   :  { %v914_v20 = vrot.slane %v913_v13, 2  ;;  %v854_v31 = vsel %vm79_vm1, %v1763_v18, 0.0 }
 0x391   :  { %v922_v23 = vadd.f32 %v921_v16, %v920_v49  ;;  %v1001_v2 = vpop.permute.xlu1 %1000 }
 0x392   :  { %v915_v24 = vadd.f32 %v914_v20, %v913_v13  ;;  %vm1003_vm5 = vcmp.eq.s32.totalorder %v1518_v12, %v1001_v2 }
 0x393   :  { %v923_v25 = vrot.slane %v922_v23, 1  ;;  %v1005_v6 = vsel %vm1003_vm5, %v1358_v30, 0.0 }
 0x394   :  { %v916_v26 = vrot.slane %v915_v24, 1  ;;  %v1009_v28 = vsel %vm79_vm1, %v1005_v6, 0.0 }
 0x395   :  { %v924_v19 = vadd.f32 %v923_v25, %v922_v23  ;;  %v1156_v38 = vpop.permute.xlu1 %1155 }
 0x396   :  { %v917_v29 = vadd.f32 %v916_v26, %v915_v24  ;;  %vm1158_vm8 = vcmp.eq.s32.totalorder %v1518_v12, %v1156_v38  ;;  %v1457_v24 = vmov 0.0  }
 0x397   :  { %1413 = vlog2.f32 %v924_v19  ;;  %v1160_v11 = vsel %vm1158_vm8, %v1820_v42, 0.0  ;;  %25 = vst.msk [vmem:[#allocation3] sm:$0x3] %vm24_vm12, %v1457_v24 }
 0x398   :  { %1415 = vlog2.f32 %v917_v29  ;;  %v1164_v49 = vsel %vm79_vm1, %v1160_v11, 0.0 }
 0x3a4   :  { %v1414_v63 = vpop.eup %1413 }
 0x3a5   :  { %v1416_v33 = vpop.eup %1415  ;;  %v928_v36 = vmul.f32 0.6931472, %v1414_v63 }
 0x3a6   :  { %v926_v37 = vmul.f32 0.6931472, %v1416_v33 }
 0x3a7   :  { %v930_v39 = vadd.f32 %v928_v36, %v1724_v34 }
 0x3a8   :  { %v929_v41 = vadd.f32 %v926_v37, %v1726_v35  ;;  %v231_v35 = vsel %vm79_vm1, %v229_v32, 0.0 }
 0x3aa   :  { %v939_v61 = vsel %vm96_vm2, %v930_v39, %v929_v41 }
 0x3ab   :  { %v947_v43 = vsel %vm936_vm9, %v939_v61, %v1657_v62  ;;  %v998_v62 = vpop.permute.xlu0 %997  ;;  %vm1027_vm9 = vcmp.gt.f32.partialorder %v1825_v8, 0.0 }
 0x3ac   :  { %v953_v45 = vrot.slane %v947_v43, 5  ;;  %v952_v46 = vrot.slane %v947_v43, 4  ;;  %vm1002_vm14 = vcmp.eq.s32.totalorder %v1518_v12, %v998_v62 }
 0x3ad   :  { %v1004_v17 = vsel %vm1002_vm14, %v1357_v55, 0.0 }
 0x3ae   :  { %v1040_v47 = vrot.slane %v953_v45, %v1505_v7  ;;  %v1099_v5 = vrot.slane %v953_v45, 3  ;;  %v1033_v51 = vrot.slane %v952_v46, %v1505_v7  ;;  %v1098_v52 = vrot.slane %v952_v46, 4 }
 0x3af   :  { %v1153_v44 = vpop.permute.xlu0 %1152  ;;  %v1006_v58 = vsel %vm79_vm1, %v1004_v17, 0.0 }
 0x3b0   :  { %1042 = vbcast.lane.b32.xlu1 %v1040_v47, 256  ;;  %1035 = vbcast.lane.b32.xlu0 %v1033_v51, 256  ;;  %v1773_v34 = vsel %vm96_vm2, %v1099_v5, %v1098_v52  ;;  %vm1157_vm15 = vcmp.eq.s32.totalorder %v1518_v12, %v1153_v44  ;;  %v1087_v12 = vsel %vm1027_vm9, 1, %v1455_v4 }
 0x3b1   :  { %v1159_v21 = vsel %vm1157_vm15, %v1798_v54, 0.0 }
 0x3b2   :  { %v1161_v59 = vsel %vm79_vm1, %v1159_v21, 0.0 }
 0x3cf   :  { %232 = vadd.xlane.f32.xlu0 %v231_v35 }
 0x3d3   :  { %235 = vadd.xlane.f32.xlu0 %v234_v14 }
 0x3d4   :  { %852 = vadd.xlane.f32.xlu1 %v851_v50 }
 0x3d7   :  { %390 = vadd.xlane.f32.xlu0 %v389_v56 }
 0x3d8   :  { %1007 = vadd.xlane.f32.xlu1 %v1006_v58 }
 0x3db   :  { %545 = vadd.xlane.f32.xlu0 %v544_v57 }
 0x3dc   :  { %1162 = vadd.xlane.f32.xlu1 %v1161_v59 }
 0x3df   :  { %700 = vadd.xlane.f32.xlu0 %v699_v0 }
 0x3e3   :  { %855 = vadd.xlane.f32.xlu0 %v854_v31 }
 0x3e7   :  { %1010 = vadd.xlane.f32.xlu0 %v1009_v28 }
 0x3eb   :  { %1165 = vadd.xlane.f32.xlu0 %v1164_v49 }
 0x3ed   :  { %1089 = vperm.xlu1 %1375, %v1087_v12  }
 0x402   :  { %v82_v40 = vpop.xlane.xlu0 %81 }
 0x403   :  { %v91_v16 = vrot.slane %v82_v40, %v1509_v9 }
 0x406   :  { %v85_v13 = vpop.xlane.xlu1 %84 }
 0x407   :  { %v95_v18 = vrot.slane %v85_v13, %v1509_v9 }
 0x409   :  { %v97_v20 = vsel %vm96_vm2, %v95_v18, %v91_v16 }
 0x40a   :  { %v100_v23 = vsel %vm22_vm11, %v97_v20, 0.0  ;;  %v1839_v25 = vpop.xlane.xlu1 %387 }
 0x40b   :  { %101 = vadd.xlane.f32.xlu0 %v100_v23  ;;  %v397_v24 = vrot.slane %v1839_v25, %v1509_v9 }
 0x40e   :  { %v1841_v26 = vpop.xlane.xlu1 %542 }
 0x412   :  { %v1843_v19 = vpop.xlane.xlu1 %697 }
 0x422   :  { %v1043_v29 = vpop.permute.xlu1 %1042  ;;  %v1036_v63 = vpop.permute.xlu0 %1035 }
 0x423   :  { %v1045_v33 = vadd.f32 %v1358_v30, %v1043_v29  ;;  %v1044_v36 = vadd.f32 %v1357_v55, %v1036_v63 }
 0x425   :  { %v1053_v37 = vsel %vm79_vm1, %v1045_v33, -inf  ;;  %v1046_v39 = vsel %vm79_vm1, %v1044_v36, -inf }
 0x426   :  { %v1054_v41 = vrot.slane %v1053_v37, 4  ;;  %v1047_v61 = vrot.slane %v1046_v39, 4 }
 0x428   :  { %v1055_v43 = vmax.f32 %v1053_v37, %v1054_v41  ;;  %v1048_v45 = vmax.f32 %v1046_v39, %v1047_v61  ;;  %v552_v61 = vrot.slane %v1841_v26, %v1509_v9 }
 0x42a   :  { %v1056_v46 = vrot.slane %v1055_v43, 2  ;;  %v1049_v47 = vrot.slane %v1048_v45, 2 }
 0x42c   :  { %v1057_v5 = vmax.f32 %v1055_v43, %v1056_v46  ;;  %v1050_v51 = vmax.f32 %v1048_v45, %v1049_v47 }
 0x42e   :  { %v1058_v52 = vrot.slane %v1057_v5, 1  ;;  %v1051_v32 = vrot.slane %v1050_v51, 1 }
 0x430   :  { %v1059_v62 = vmax.f32 %v1057_v5, %v1058_v52  ;;  %v1052_v35 = vmax.f32 %v1050_v51, %v1051_v32  ;;  %v707_v52 = vrot.slane %v1843_v19, %v1509_v9 }
 0x432   :  { %v1061_v53 = vsub.f32 %v1045_v33, %v1059_v62  ;;  %v1060_v44 = vsub.f32 %v1044_v36, %v1052_v35 }
 0x434   :  { %v1064_v14 = vmul.f32 1.442695, %v1061_v53  ;;  %v1062_v55 = vmul.f32 1.442695, %v1060_v44 }
 0x436   :  { %1417 = vpow2.f32 %v1064_v14 }
 0x437   :  { %1419 = vpow2.f32 %v1062_v55 }
 0x443   :  { %v1418_v50 = vpop.eup %1417 }
 0x444   :  { %v1420_v10 = vpop.eup %1419  ;;  %v1073_v17 = vsel %vm79_vm1, %v1418_v50, 0.0 }
 0x445   :  { %v1074_v56 = vrot.slane %v1073_v17, 4  ;;  %v1066_v58 = vsel %vm79_vm1, %v1420_v10, 0.0 }
 0x446   :  { %v1067_v22 = vrot.slane %v1066_v58, 4 }
 0x447   :  { %v1075_v21 = vadd.f32 %v1074_v56, %v1073_v17 }
 0x448   :  { %v1068_v57 = vadd.f32 %v1067_v22, %v1066_v58 }
 0x449   :  { %v1076_v2 = vrot.slane %v1075_v21, 2 }
 0x44a   :  { %v1069_v59 = vrot.slane %v1068_v57, 2 }
 0x44b   :  { %v1077_v60 = vadd.f32 %v1076_v2, %v1075_v21 }
 0x44c   :  { %v1070_v0 = vadd.f32 %v1069_v59, %v1068_v57 }
 0x44d   :  { %v1078_v30 = vrot.slane %v1077_v60, 1 }
 0x44e   :  { %v1071_v38 = vrot.slane %v1070_v0, 1 }
 0x44f   :  { %v1079_v31 = vadd.f32 %v1078_v30, %v1077_v60 }
 0x450   :  { %v1072_v6 = vadd.f32 %v1071_v38, %v1070_v0 }
 0x451   :  { %1421 = vlog2.f32 %v1079_v31  ;;  %v1365_v31 = vld [vmem:[%s1927_s2 + $0xe] sm:$0x3] }
 0x452   :  { %1423 = vlog2.f32 %v1072_v6  ;;  %vm1182_vm13 = vcmp.gt.f32.partialorder %v1365_v31, 0.0 }
 0x458   :  { %v233_v28 = vpop.xlane.xlu0 %232 }
 0x459   :  { %v242_v49 = vrot.slane %v233_v28, %v1509_v9 }
 0x45c   :  { %v236_v11 = vpop.xlane.xlu0 %235 }
 0x45d   :  { %v246_v12 = vrot.slane %v236_v11, %v1509_v9  ;;  %v853_v40 = vpop.xlane.xlu1 %852  ;;  %v1242_v11 = vsel %vm1182_vm13, 1, %v1455_v4 }
 0x45e   :  { %v1422_v13 = vpop.eup %1421  ;;  %v862_v10 = vrot.slane %v853_v40, %v1509_v9 }
 0x45f   :  { %v1424_v16 = vpop.eup %1423  ;;  %v247_v18 = vsel %vm96_vm2, %v246_v12, %v242_v49  ;;  %v1083_v33 = vmul.f32 0.6931472, %v1422_v13  ;;  %v38_v13 = vld [vmem:[%s1927_s2] sm:$0x3]  ;;  %s1458_s2 = smov 5  }
 0x460   :  { %v391_v20 = vpop.xlane.xlu0 %390  ;;  %v249_v23 = vsel %vm22_vm11, %v247_v18, 0.0  ;;  %v1081_v36 = vmul.f32 0.6931472, %v1424_v16  ;;  %vm103_vm15 = vcmp.gt.f32.partialorder %v38_v13, 0.0  ;;  %v33_v18 = vld [vmem:[#allocation3] sm:$0x3] }
 0x461   :  { %v401_v29 = vrot.slane %v391_v20, %v1509_v9  ;;  %v1008_v63 = vpop.xlane.xlu1 %1007  ;;  %250 = vadd.xlane.f32.xlu0 %v249_v23  ;;  %v1085_v46 = vadd.f32 %v1083_v33, %v1059_v62 }
 0x462   :  { %v1084_v25 = vadd.f32 %v1081_v36, %v1052_v35  ;;  %v1017_v57 = vrot.slane %v1008_v63, %v1509_v9 }
 0x463   :  { %v402_v37 = vsel %vm96_vm2, %v401_v29, %v397_v24 }
 0x464   :  { %v546_v39 = vpop.xlane.xlu0 %545  ;;  %v404_v41 = vsel %vm22_vm11, %v402_v37, 0.0  ;;  %v1094_v26 = vsel %vm96_vm2, %v1085_v46, %v1084_v25 }
 0x465   :  { %v556_v43 = vrot.slane %v546_v39, %v1509_v9  ;;  %v1163_v45 = vpop.xlane.xlu1 %1162  ;;  %405 = vadd.xlane.f32.xlu0 %v404_v41 }
 0x466   :  { %v1172_v30 = vrot.slane %v1163_v45, %v1509_v9 }
 0x467   :  { %v557_v47 = vsel %vm96_vm2, %v556_v43, %v552_v61 }
 0x468   :  { %v701_v5 = vpop.xlane.xlu0 %700  ;;  %v559_v51 = vsel %vm22_vm11, %v557_v47, 0.0 }
 0x469   :  { %v711_v32 = vrot.slane %v701_v5, %v1509_v9  ;;  %v1090_v53 = vpop.permute.xlu1 %1089  ;;  %560 = vadd.xlane.f32.xlu0 %v559_v51 }
 0x46a   :  { %vm1091_vm14 = vcmp.eq.s32.totalorder %v1090_v53, 1 }
 0x46b   :  { %v1102_v44 = vsel %vm1091_vm14, %v1094_v26, %v1773_v34  ;;  %v712_v62 = vsel %vm96_vm2, %v711_v32, %v707_v52 }
 0x46c   :  { %v856_v35 = vpop.xlane.xlu0 %855  ;;  %v714_v14 = vsel %vm22_vm11, %v712_v62, 0.0  ;;  %v1107_v55 = vrot.slane %v1102_v44, 4  ;;  %v1108_v50 = vrot.slane %v1102_v44, 5 }
 0x46d   :  { %v866_v19 = vrot.slane %v856_v35, %v1509_v9  ;;  %715 = vadd.xlane.f32.xlu1 %v714_v14 }
 0x46e   :  { %v1253_v17 = vrot.slane %v1107_v55, 4  ;;  %v1254_v56 = vrot.slane %v1108_v50, 3  ;;  %v1188_v49 = vrot.slane %v1107_v55, %v1505_v7 }
 0x46f   :  { %v867_v58 = vsel %vm96_vm2, %v866_v19, %v862_v10 }
 0x470   :  { %v1011_v22 = vpop.xlane.xlu0 %1010  ;;  %v869_v21 = vsel %vm22_vm11, %v867_v58, 0.0  ;;  %v1875_v34 = vsel %vm96_vm2, %v1254_v56, %v1253_v17 }
 0x471   :  { %v1021_v2 = vrot.slane %v1011_v22, %v1509_v9  ;;  %870 = vadd.xlane.f32.xlu0 %v869_v21 }
 0x473   :  { %v1022_v59 = vsel %vm96_vm2, %v1021_v2, %v1017_v57 }
 0x474   :  { %v1166_v60 = vpop.xlane.xlu0 %1165  ;;  %v1024_v0 = vsel %vm22_vm11, %v1022_v59, 0.0 }
 0x475   :  { %v1176_v38 = vrot.slane %v1166_v60, %v1509_v9  ;;  %1025 = vadd.xlane.f32.xlu0 %v1024_v0  ;;  %v1195_v9 = vrot.slane %v1108_v50, %v1505_v7 }
 0x477   :  { %v1177_v6 = vsel %vm96_vm2, %v1176_v38, %v1172_v30 }
 0x478   :  { %v1179_v28 = vsel %vm22_vm11, %v1177_v6, 0.0 }
 0x479   :  { %1180 = vadd.xlane.f32.xlu0 %v1179_v28 }
 0x47e   :  { %1244 = vperm.xlu1 %1375, %v1242_v11  }
 0x48f   :  { %1190 = vbcast.lane.b32.xlu0 %v1188_v49, 256 }
 0x493   :  { %1197 = vbcast.lane.b32.xlu0 %v1195_v9, 256 }
 0x494   :  { %v102_v12 = vpop.xlane.xlu0 %101 }
 0x495   :  { %v104_v20 = vsel %vm103_vm15, %v102_v12, 0.0 }
 0x496   :  { %v105_v23 = vadd.f32 %v104_v20, %v33_v18 }
 0x4ea   :  { %v251_v40 = vpop.xlane.xlu0 %250 }
 0x4eb   :  { %v253_v4 = vsel %vm252_vm0, %v251_v40, 0.0 }
 0x4ec   :  { %v254_v7 = vadd.f32 %v253_v4, %v105_v23 }
 0x4ee   :  { %v406_v16 = vpop.xlane.xlu0 %405 }
 0x4ef   :  { %v408_v29 = vsel %vm407_vm4, %v406_v16, 0.0 }
 0x4f0   :  { %v409_v36 = vadd.f32 %v408_v29, %v254_v7 }
 0x4f2   :  { %v561_v24 = vpop.xlane.xlu0 %560 }
 0x4f3   :  { %v563_v33 = vsel %vm562_vm6, %v561_v24, 0.0 }
 0x4f4   :  { %v564_v41 = vadd.f32 %v563_v33, %v409_v36 }
 0x4f6   :  { %v716_v63 = vpop.xlane.xlu1 %715 }
 0x4f7   :  { %v718_v39 = vsel %vm717_vm7, %v716_v63, 0.0 }
 0x4f8   :  { %v719_v61 = vadd.f32 %v718_v39, %v564_v41 }
 0x4fa   :  { %v871_v37 = vpop.xlane.xlu0 %870  ;;  %v1245_v23 = vpop.permute.xlu1 %1244 }
 0x4fb   :  { %v873_v1 = vsel %vm872_vm10, %v871_v37, 0.0  ;;  %vm1246_vm0 = vcmp.eq.s32.totalorder %v1245_v23, 1 }
 0x4fc   :  { %v874_v45 = vadd.f32 %v873_v1, %v719_v61 }
 0x4fe   :  { %v1026_v43 = vpop.xlane.xlu0 %1025 }
 0x4ff   :  { %v1028_v3 = vsel %vm1027_vm9, %v1026_v43, 0.0 }
 0x500   :  { %v1029_v46 = vadd.f32 %v1028_v3, %v874_v45  ;;  %v1292_v45 = vld [vmem:[%s1928_s3] sm:$0x3]  ;;  %s1433_s3 = scalar_lea.vmem %s1324_s29, 16 }
 0x501   :  { %p1434_p0 = scmp.ne.s32.totalorder %s1324_s29, %s1433_s3  ;;  %p1439_p2 = scmp.lt.s32.totalorder %s1437_s6, %s1433_s3 }
 0x502   :  { %v1181_v25 = vpop.xlane.xlu0 %1180 }
 0x503   :  { %v1183_v15 = vsel %vm1182_vm13, %v1181_v25, 0.0  ;;  %p1440_p3 = por %p1439_p2, %p1438_p1 }
 0x504   :  { %v1184_v47 = vadd.f32 %v1183_v15, %v1029_v46 }
 0x505   :  { %p1441_p4 = pnand %p1440_p3, %p1434_p0 }
 0x506   :  { %1277 = vst.msk [vmem:[#allocation3] sm:$0x3] %vm24_vm12, %v1184_v47  ;;  %v1191_v5 = vpop.permute.xlu0 %1190  ;;  %v1282_v27 = vrot.slane %v1184_v47, 4  ;;  %v1283_v8 = vrot.slane %v1184_v47, 5 }
 0x507   :  { %v1199_v51 = vadd.f32 %v1798_v54, %v1191_v5 }
 0x508   :  { %1284 = vrot.lane.b32.xlu0 %v1282_v27, %s1458_s2 }
 0x509   :  { %v1201_v48 = vsel %vm79_vm1, %v1199_v51, -inf }
 0x50a   :  { %v1202_v52 = vrot.slane %v1201_v48, 4  ;;  %v1198_v32 = vpop.permute.xlu0 %1197 }
 0x50b   :  { %v1200_v53 = vadd.f32 %v1820_v42, %v1198_v32 }
 0x50c   :  { %v1203_v26 = vmax.f32 %v1201_v48, %v1202_v52  ;;  %1286 = vrot.lane.b32.xlu0 %v1283_v8, %s1458_s2 }
 0x50d   :  { %v1208_v44 = vsel %vm79_vm1, %v1200_v53, -inf }
 0x50e   :  { %v1204_v62 = vrot.slane %v1203_v26, 2  ;;  %v1209_v35 = vrot.slane %v1208_v44, 4 }
 0x510   :  { %v1205_v14 = vmax.f32 %v1203_v26, %v1204_v62  ;;  %v1210_v55 = vmax.f32 %v1208_v44, %v1209_v35 }
 0x512   :  { %v1206_v50 = vrot.slane %v1205_v14, 1  ;;  %v1211_v10 = vrot.slane %v1210_v55, 2 }
 0x514   :  { %v1207_v54 = vmax.f32 %v1205_v14, %v1206_v50  ;;  %v1212_v19 = vmax.f32 %v1210_v55, %v1211_v10 }
 0x516   :  { %v1215_v17 = vsub.f32 %v1199_v51, %v1207_v54  ;;  %v1213_v56 = vrot.slane %v1212_v19, 1 }
 0x518   :  { %v1217_v58 = vmul.f32 1.442695, %v1215_v17  ;;  %v1214_v22 = vmax.f32 %v1212_v19, %v1213_v56 }
 0x51a   :  { %1425 = vpow2.f32 %v1217_v58  ;;  %v1216_v21 = vsub.f32 %v1200_v53, %v1214_v22 }
 0x51c   :  { %v1219_v57 = vmul.f32 1.442695, %v1216_v21 }
 0x51e   :  { %1427 = vpow2.f32 %v1219_v57 }
 0x527   :  { %v1426_v42 = vpop.eup %1425 }
 0x528   :  { %v1221_v2 = vsel %vm79_vm1, %v1426_v42, 0.0 }
 0x529   :  { %v1222_v59 = vrot.slane %v1221_v2, 4 }
 0x52b   :  { %v1428_v60 = vpop.eup %1427  ;;  %v1223_v0 = vadd.f32 %v1222_v59, %v1221_v2 }
 0x52c   :  { %v1228_v30 = vsel %vm79_vm1, %v1428_v60, 0.0  ;;  %vm1293_vm1 = vcmp.gt.f32.partialorder %v1292_v45, 0.0 }
 0x52d   :  { %v1224_v38 = vrot.slane %v1223_v0, 2  ;;  %v1229_v31 = vrot.slane %v1228_v30, 4 }
 0x52f   :  { %v1225_v6 = vadd.f32 %v1224_v38, %v1223_v0  ;;  %v1230_v28 = vadd.f32 %v1229_v31, %v1228_v30 }
 0x531   :  { %v1226_v11 = vrot.slane %v1225_v6, 1  ;;  %v1231_v49 = vrot.slane %v1230_v28, 2 }
 0x533   :  { %v1227_v9 = vadd.f32 %v1226_v11, %v1225_v6  ;;  %v1232_v12 = vadd.f32 %v1231_v49, %v1230_v28 }
 0x535   :  { %1429 = vlog2.f32 %v1227_v9  ;;  %v1233_v40 = vrot.slane %v1232_v12, 1 }
 0x537   :  { %v1234_v13 = vadd.f32 %v1233_v40, %v1232_v12 }
 0x539   :  { %1431 = vlog2.f32 %v1234_v13 }
 0x542   :  { %v1430_v16 = vpop.eup %1429 }
 0x543   :  { %v1236_v18 = vmul.f32 0.6931472, %v1430_v16 }
 0x545   :  { %v1239_v24 = vadd.f32 %v1236_v18, %v1207_v54 }
 0x546   :  { %v1432_v20 = vpop.eup %1431 }
 0x547   :  { %v1238_v4 = vmul.f32 0.6931472, %v1432_v20 }
 0x549   :  { %v1240_v29 = vadd.f32 %v1238_v4, %v1214_v22 }
 0x54b   :  { %v1249_v7 = vsel %vm96_vm2, %v1240_v29, %v1239_v24 }
 0x54c   :  { %v1257_v63 = vsel %vm1246_vm0, %v1249_v7, %v1875_v34 }
 0x54d   :  { %v1263_v33 = vrot.slane %v1257_v63, 5  ;;  %v1262_v36 = vrot.slane %v1257_v63, 4 }
 0x57a   :  { %v1285_v37 = vpop.permute.xlu0 %1284 }
 0x57b   :  { %v1290_v39 = vsub.f32 %v1262_v36, %v1285_v37 }
 0x57d   :  { %v1296_v61 = vrot.slane %v1290_v39, 4 }
 0x57e   :  { %v1287_v41 = vpop.permute.xlu0 %1286 }
 0x57f   :  { %v1291_v1 = vsub.f32 %v1263_v33, %v1287_v41 }
 0x581   :  { %v1297_v43 = vrot.slane %v1291_v1, 3 }
 0x583   :  { %v1298_v3 = vsel %vm96_vm2, %v1297_v43, %v1296_v61  ;;  %vm1315_vm2 = vcmask 0  }
 0x584   :  { %1299 = vrot.lane.b32.xlu0 %v1298_v3, %s1459_s25 }
 0x5f6   :  { %v1300_v46 = vpop.permute.xlu0 %1299 }
 0x5f7   :  { %v1302_v25 = vsel %vm1293_vm1, %v1300_v46, 0.0 }
 0x5f8   :  { %v1303_v34 = vsel %vm24_vm12, %v1302_v25, 0.0 }
 0x5f9   :  { %1304 = vadd.xlane.f32.xlu0 %v1303_v34 }
 0x682   :  { %v1305_v15 = vpop.xlane.xlu0 %1304 }
 0x683   :  { %v1306_v47 = vrot.slane %v1305_v15, 4 }
 0x685   :  { %v1307_v5 = vadd.f32 %v1306_v47, %v1305_v15 }
 0x687   :  { %v1308_v27 = vrot.slane %v1307_v5, 2 }
 0x689   :  { %v1309_v51 = vadd.f32 %v1308_v27, %v1307_v5 }
 0x68b   :  { %v1310_v48 = vrot.slane %v1309_v51, 1 }
 0x68d   :  { %v1311_v52 = vadd.f32 %v1310_v48, %v1309_v51 }
 0x68f   :  { %1367 = vpush %v1311_v52 }
 0x6c0   :  { %s1368_s30 = spop %1367 }
 0x6c1   :  { %s1313_s5 = smul.f32 0.5, %s1368_s30 }
 0x6c3   :  { %v1314_v32 = vstv %s1313_s5 }
 0x6c4   :  { %1316 = vst.msk [vmem:[#allocation4] sm:$0x1] %vm1315_vm2, %v1314_v32 }
 0x6c5   :  { %1444 = shalt.err (!%p1441_p4)
}
 0x6c6   :  { %1326 = dma.vmem_to_hbm [thread:$0]  %s1324_s29, 16, %s1929_s4, [#allocation5]  }
 0x6c7   :  { %1453 = dma.done.wait [#allocation5], 16  }
 0x6c8   :  { %1454 = vsyncadd [#allocation5], 4294967280 }
 0x6c9   :  { %1330 = vsyncpa [#allocation5], 1 }

</bundles_post_ra>
